<compile_context>
chip_gen: v5e
topology: v5e:2x2
jax: 0.10.0
libtpu: 0.0.40
codegen_flags: <defaults>
</compile_context>

<pallas_src>
import functools

import jax
import jax.numpy as jnp
from jax.experimental import pallas as pl
from jax.experimental.pallas import tpu as pltpu


# ----------------------------------------------------------------------------
# Fused kernel: one grid step = BB whole sequences (pool+conv, Gram, GRU, mean)
# ----------------------------------------------------------------------------
def pffbp_seq_kernel(x_ref, m_ref, fb_ref, gw_ref, gb_ref, o_ref, *, c, kp, hd):
    # x_ref : (T, BB, Cin, S)   frames of the BB sequences handled by this grid step
    # m_ref : (Cin*S, C*KP)     fused adaptive-avg-pool + 1x1-conv matrix
    # fb_ref: (1, C*KP)         conv bias broadcast over the KP pool positions
    # gw_ref: (C*C + Hd, 3*Hd)  [W_ih^T ; W_hh^T]
    # gb_ref: (2, 3*Hd)         [b_ih ; b_hh]
    # o_ref : (1, BB, Hd)       time-mean GRU hidden state of these sequences
    t_len, bb, cin, s = x_ref.shape
    d = c * c
    n = t_len * bb                                   # flat frame index = t*BB + b

    # ---- fused adaptive-avg-pool + 1x1 conv + ReLU: one lane-dense MXU matmul ----
    x = x_ref[...].reshape(n, cin * s)               # (N, Cin*S)
    y = jnp.dot(x, m_ref[...], preferred_element_type=jnp.float32)   # (N, C*KP)
    y = jnp.maximum(y + fb_ref[...], 0.0)

    # ---- bilinear (Gram) pooling + sqrt + L2 normalize (rsqrt -> EUP slot) ----
    yk = y.reshape(n, c, kp)                         # one lane->(sublane,lane) relayout
    gram = jnp.einsum('nck,ndk->ncd', yk, yk,
                      preferred_element_type=jnp.float32) * (1.0 / kp)   # (N, C, C)
    g = jnp.sqrt(gram + 1e-10)
    # ||g||^2 == sum(gram) + C*C*1e-10 (algebraic identity -> no g*g pass).
    # F.normalize's 1e-12 clamp never binds: every entry of g >= 1e-5.
    ss = jnp.sum(jnp.sum(gram, axis=2), axis=1, keepdims=True) + d * 1e-10   # (N, 1)
    bp = g * jax.lax.rsqrt(ss)[:, :, None]           # (N, C, C)

    # ---- GRU input projection hoisted out of the recurrence: one flat matmul ----
    bpf = bp.reshape(n, d)                           # one (sublane,lane)->lane relayout
    wih = gw_ref[0:d, :]                             # (D, 3*Hd)
    whh = gw_ref[d:d + hd, :]                        # (Hd, 3*Hd)
    bih = gb_ref[0:1, :]                             # (1, 3*Hd)
    bhh = gb_ref[1:2, :]                             # (1, 3*Hd)
    gx = jnp.dot(bpf, wih, preferred_element_type=jnp.float32) + bih   # (N, 3*Hd)

    # ---- GRU recurrence over time, fully unrolled; state stays in vregs ----
    h = jnp.zeros((bb, hd), jnp.float32)
    h_sum = jnp.zeros((bb, hd), jnp.float32)
    for t in range(t_len):                           # static T, unrolled
        gxt = gx[t * bb:(t + 1) * bb, :]             # (BB, 3*Hd)
        gh = jnp.dot(h, whh, preferred_element_type=jnp.float32) + bhh
        rz = jax.nn.sigmoid(gxt[:, :2 * hd] + gh[:, :2 * hd])   # r|z in one sigmoid
        r = rz[:, :hd]
        z = rz[:, hd:]
        n_g = jnp.tanh(gxt[:, 2 * hd:] + r * gh[:, 2 * hd:])
        h = (1.0 - z) * n_g + z * h
        h_sum = h_sum + h
    o_ref[0] = h_sum * (1.0 / t_len)


# ----------------------------------------------------------------------------
# Host wrapper: free metadata reshapes + small constant fused weight matrices
# ----------------------------------------------------------------------------
def _default_grid_blocks(b_seq):
    # v7x has 2 TensorCores per chip (shard the "parallel" grid axis across them);
    # v5e/v6e have 1, where a single batched grid step avoids the ~0.35 us/step
    # fixed cost.  Any detection failure falls back to 1, which is always correct.
    try:
        kind = jax.devices()[0].device_kind.lower()
        n_cores = 2 if "v7" in kind else 1
    except Exception:
        n_cores = 1
    blocks = max(1, min(b_seq, n_cores))
    if b_seq % blocks:
        blocks = 1
    return blocks


def pffbp_seq_neck(feat, params, *, pool_h, pool_w, hidden, seq_len_max,
                   grid_blocks=None):
    n_frames, cin, h, w = feat.shape
    assert n_frames % seq_len_max == 0
    b_seq = n_frames // seq_len_max
    # PyTorch adaptive_avg_pool2d uses variable-size windows when the spatial dims
    # are not divisible; the one-hot pooling matrix below assumes uniform windows.
    assert h % pool_h == 0 and w % pool_w == 0, (
        "pffbp_seq_neck requires H % pool_h == 0 and W % pool_w == 0")
    bh, bw = h // pool_h, w // pool_w
    s = h * w
    kp = pool_h * pool_w
    c = params["conv_w"].shape[1]
    d = c * c
    assert params["wih_t"].shape == (d, 3 * hidden)

    if grid_blocks is None:
        grid_blocks = _default_grid_blocks(b_seq)
    if b_seq % grid_blocks:
        grid_blocks = 1
    bb = b_seq // grid_blocks

    # zero-copy reshape: (T*B, Cin, H, W) -> (T, B, Cin, H*W); no HBM transpose.
    x4 = feat.reshape(seq_len_max, b_seq, cin, s)

    # fused adaptive-avg-pool + 1x1-conv constant:
    #   M[ci*S + sp, c*KP + k] = conv_w[ci, c] * pool_mat[sp, k]
    rows = jnp.arange(s, dtype=jnp.int32) // w
    cols = jnp.arange(s, dtype=jnp.int32) % w
    k_of_s = (rows // bh) * pool_w + (cols // bw)
    pool_mat = (k_of_s[:, None] == jnp.arange(kp, dtype=jnp.int32)[None, :]
                ).astype(jnp.float32) * (1.0 / float(bh * bw))            # (S, KP)
    m_fused = (params["conv_w"][:, None, :, None]
               * pool_mat[None, :, None, :]).reshape(cin * s, c * kp)     # (Cin*S, C*KP)
    fused_b = jnp.repeat(params["conv_b"], kp, axis=1)                    # (1, C*KP)

    # concatenated GRU weights/biases -> fewer per-step DMA streams.
    gru_w = jnp.concatenate([params["wih_t"], params["whh_t"]], axis=0)   # (D+Hd, 3*Hd)
    gru_b = jnp.concatenate([params["bih"], params["bhh"]], axis=0)       # (2, 3*Hd)

    kernel = functools.partial(pffbp_seq_kernel, c=c, kp=kp, hd=hidden)

    # Per-step VMEM: x block T*BB*Cin*S*4B (64 KB at the demo shape), m_fused ~1 MB,
    # everything else a few KB; with x2 pipeline buffers this is ~2.2 MB -- far under
    # the 32 MiB scoped default on every generation (incl. v7x's smaller 64 MiB VMEM).
    out = pl.pallas_call(
        kernel,
        out_shape=jax.ShapeDtypeStruct((grid_blocks, bb, hidden), jnp.float32),
        grid_spec=pltpu.PrefetchScalarGridSpec(
            num_scalar_prefetch=0,
            grid=(grid_blocks,),
            in_specs=[
                pl.BlockSpec((seq_len_max, bb, cin, s), lambda blk: (0, blk, 0, 0)),
                pl.BlockSpec((cin * s, c * kp), lambda blk: (0, 0)),
                pl.BlockSpec((1, c * kp), lambda blk: (0, 0)),
                pl.BlockSpec((d + hidden, 3 * hidden), lambda blk: (0, 0)),
                pl.BlockSpec((2, 3 * hidden), lambda blk: (0, 0)),
            ],
            out_specs=pl.BlockSpec((1, bb, hidden), lambda blk: (blk, 0, 0)),
        ),
        compiler_params=pltpu.CompilerParams(
            dimension_semantics=("parallel",)),
    )(x4, m_fused, fused_b, gru_w, gru_b)
    return out.reshape(b_seq, hidden)


# ----------------------------------------------------------------------------
# Pure-JAX reference (faithful to the PyTorch module) for a sanity check
# ----------------------------------------------------------------------------
def reference(feat, params, *, pool_h, pool_w, hidden, seq_len_max):
    n, cin, h, w = feat.shape
    bh, bw = h // pool_h, w // pool_w
    pooled = feat.reshape(n, cin, pool_h, bh, pool_w, bw).mean(axis=(3, 5))
    y = jnp.einsum("nchw,cd->ndhw", pooled, params["conv_w"])
    y = y + params["conv_b"][0][None, :, None, None]
    y = jnp.maximum(y, 0.0)
    c = y.shape[1]
    yf = y.reshape(n, c, pool_h * pool_w)
    g = jnp.einsum("ncx,ndx->ncd", yf, yf) / (pool_h * pool_w)
    g = jnp.sqrt(g.reshape(n, -1) + 1e-10)
    g = g / jnp.maximum(jnp.linalg.norm(g, axis=1, keepdims=True), 1e-12)
    b = n // seq_len_max
    xs = g.reshape(seq_len_max, b, -1)
    hst = jnp.zeros((b, hidden), jnp.float32)
    outs = []
    for t in range(seq_len_max):
        gx = xs[t] @ params["wih_t"] + params["bih"]
        gh = hst @ params["whh_t"] + params["bhh"]
        r = jax.nn.sigmoid(gx[:, :hidden] + gh[:, :hidden])
        z = jax.nn.sigmoid(gx[:, hidden:2 * hidden] + gh[:, hidden:2 * hidden])
        nn_ = jnp.tanh(gx[:, 2 * hidden:] + r * gh[:, 2 * hidden:])
        hst = (1.0 - z) * nn_ + z * hst
        outs.append(hst)
    return jnp.stack(outs, 0).mean(0)


if __name__ == "__main__":
    # seq_len_max=4, seq batch=2 -> N=8 frames, Cin=8, 16x16 spatial,
    # adaptive pool to 4x4, pool_c=8 (bilinear dim = 64), GRU hidden=16.
    SEQ_LEN_MAX, B_SEQ = 4, 2
    N = SEQ_LEN_MAX * B_SEQ
    CIN, H, W = 8, 16, 16
    POOL_H, POOL_W, POOL_C = 4, 4, 8
    HIDDEN = 16
    D = POOL_C * POOL_C

    key = jax.random.PRNGKey(0)
    k1, k2, k3, k4, k5, k6, k7 = jax.random.split(key, 7)
    feat = jax.random.normal(k1, (N, CIN, H, W), jnp.float32)
    params = dict(
        conv_w=0.1 * jax.random.normal(k2, (CIN, POOL_C), jnp.float32),
        conv_b=0.1 * jax.random.normal(k3, (1, POOL_C), jnp.float32),
        wih_t=0.1 * jax.random.normal(k4, (D, 3 * HIDDEN), jnp.float32),
        whh_t=0.1 * jax.random.normal(k5, (HIDDEN, 3 * HIDDEN), jnp.float32),
        bih=0.1 * jax.random.normal(k6, (1, 3 * HIDDEN), jnp.float32),
        bhh=0.1 * jax.random.normal(k7, (1, 3 * HIDDEN), jnp.float32),
    )

    out = pffbp_seq_neck(feat, params, pool_h=POOL_H, pool_w=POOL_W,
                         hidden=HIDDEN, seq_len_max=SEQ_LEN_MAX)
    out = jax.block_until_ready(out)

    ref = reference(feat, params, pool_h=POOL_H, pool_w=POOL_W,
                    hidden=HIDDEN, seq_len_max=SEQ_LEN_MAX)
    assert out.shape == (B_SEQ, HIDDEN)
    assert jnp.allclose(out, ref, atol=5e-3, rtol=5e-3), (out, ref)
    print("KERNEL_OK")
</pallas_src>

<mosaic_0001>
module attributes {stable_mosaic.version = 11 : i64} {
  func.func @pffbp_seq_kernel(%arg0: i32, %arg1: memref<4x2x8x256xf32, #tpu.memory_space<vmem>>, %arg2: memref<2048x128xf32, #tpu.memory_space<vmem>>, %arg3: memref<1x128xf32, #tpu.memory_space<vmem>>, %arg4: memref<80x48xf32, #tpu.memory_space<vmem>>, %arg5: memref<2x48xf32, #tpu.memory_space<vmem>>, %arg6: memref<1x2x16xf32, #tpu.memory_space<vmem>>) attributes {dimension_semantics = [#tpu.dimension_semantics<parallel>], iteration_bounds = array<i64: 1>, scalar_prefetch = 0 : i64, scratch_operands = 0 : i64, tpu.core_type = #tpu.core_type<tc>, window_params = [{transform_indices = @transform_0, window_bounds = array<i64: 4, 2, 8, 256>}, {pipeline_mode = #tpu.pipeline_mode<synchronous>, transform_indices = @transform_1, window_bounds = array<i64: 2048, 128>}, {pipeline_mode = #tpu.pipeline_mode<synchronous>, transform_indices = @transform_2, window_bounds = array<i64: 1, 128>}, {pipeline_mode = #tpu.pipeline_mode<synchronous>, transform_indices = @transform_3, window_bounds = array<i64: 80, 48>}, {pipeline_mode = #tpu.pipeline_mode<synchronous>, transform_indices = @transform_4, window_bounds = array<i64: 2, 48>}, {transform_indices = @transform_5, window_bounds = array<i64: 1, 2, 16>}]} {
    %c0 = arith.constant 0 : index
    %c0_0 = arith.constant 0 : index
    %c0_1 = arith.constant 0 : index
    %c0_2 = arith.constant 0 : index
    %0 = vector.load %arg1[%c0, %c0_0, %c0_1, %c0_2] : memref<4x2x8x256xf32, #tpu.memory_space<vmem>>, vector<4x2x8x256xf32>
    %1 = vector.shape_cast %0 : vector<4x2x8x256xf32> to vector<8x2048xf32>
    %c0_3 = arith.constant 0 : index
    %c0_4 = arith.constant 0 : index
    %2 = vector.load %arg2[%c0_3, %c0_4] : memref<2048x128xf32, #tpu.memory_space<vmem>>, vector<2048x128xf32>
    %cst = arith.constant dense<0.000000e+00> : vector<8x128xf32>
    %3 = tpu.matmul %1, %2, %cst {dimension_numbers = #tpu.dot_dimension_numbers<[1], [0], [0], [1], [0, 0, 1, 1], [], []>} : vector<8x2048xf32>, vector<2048x128xf32>, vector<8x128xf32> -> vector<8x128xf32>
    %c0_5 = arith.constant 0 : index
    %c0_6 = arith.constant 0 : index
    %4 = vector.load %arg3[%c0_5, %c0_6] : memref<1x128xf32, #tpu.memory_space<vmem>>, vector<1x128xf32>
    %5 = vector.broadcast %4 : vector<1x128xf32> to vector<8x128xf32>
    %6 = arith.addf %3, %5 : vector<8x128xf32>
    %cst_7 = arith.constant 0.000000e+00 : f32
    %7 = vector.broadcast %cst_7 : f32 to vector<8x128xf32>
    %8 = arith.maximumf %6, %7 : vector<8x128xf32>
    %9 = vector.shape_cast %8 : vector<8x128xf32> to vector<8x8x16xf32>
    "tpu.trace_start"() <{level = 10 : i32, message = "nck,ndk->ncd"}> : () -> ()
    %cst_8 = arith.constant dense<0.000000e+00> : vector<8x8x8xf32>
    %10 = tpu.matmul %9, %9, %cst_8 {dimension_numbers = #tpu.dot_dimension_numbers<[2], [2], [1], [1], [0, 0, 0, 1, 1, 1], [0], [0]>} : vector<8x8x16xf32>, vector<8x8x16xf32>, vector<8x8x8xf32> -> vector<8x8x8xf32>
    "tpu.trace_stop"() : () -> ()
    %cst_9 = arith.constant 6.250000e-02 : f32
    %11 = vector.broadcast %cst_9 : f32 to vector<8x8x8xf32>
    %12 = arith.mulf %10, %11 : vector<8x8x8xf32>
    %cst_10 = arith.constant 1.000000e-10 : f32
    %13 = vector.broadcast %cst_10 : f32 to vector<8x8x8xf32>
    %14 = arith.addf %12, %13 : vector<8x8x8xf32>
    %15 = math.sqrt %14 : vector<8x8x8xf32>
    %cst_11 = arith.constant dense<0.000000e+00> : vector<8x8xf32>
    %16 = vector.multi_reduction <add>, %12, %cst_11 [2] : vector<8x8x8xf32> to vector<8x8xf32>
    %cst_12 = arith.constant dense<0.000000e+00> : vector<8xf32>
    %17 = vector.multi_reduction <add>, %16, %cst_12 [1] : vector<8x8xf32> to vector<8xf32>
    %18 = vector.shape_cast %17 : vector<8xf32> to vector<8x1xf32>
    %cst_13 = arith.constant 6.400000e-09 : f32
    %19 = vector.broadcast %cst_13 : f32 to vector<8x1xf32>
    %20 = arith.addf %18, %19 : vector<8x1xf32>
    %21 = math.rsqrt %20 : vector<8x1xf32>
    %22 = vector.shape_cast %21 : vector<8x1xf32> to vector<8x1x1xf32>
    %23 = vector.broadcast %22 : vector<8x1x1xf32> to vector<8x8x8xf32>
    %24 = arith.mulf %15, %23 : vector<8x8x8xf32>
    %25 = vector.shape_cast %24 : vector<8x8x8xf32> to vector<8x64xf32>
    %c0_14 = arith.constant 0 : index
    %c0_15 = arith.constant 0 : index
    %26 = vector.load %arg4[%c0_14, %c0_15] : memref<80x48xf32, #tpu.memory_space<vmem>>, vector<64x48xf32>
    %c64 = arith.constant 64 : index
    %c0_16 = arith.constant 0 : index
    %27 = vector.load %arg4[%c64, %c0_16] : memref<80x48xf32, #tpu.memory_space<vmem>>, vector<16x48xf32>
    %c0_17 = arith.constant 0 : index
    %c0_18 = arith.constant 0 : index
    %28 = vector.load %arg5[%c0_17, %c0_18] : memref<2x48xf32, #tpu.memory_space<vmem>>, vector<1x48xf32>
    %c1 = arith.constant 1 : index
    %c0_19 = arith.constant 0 : index
    %29 = vector.load %arg5[%c1, %c0_19] : memref<2x48xf32, #tpu.memory_space<vmem>>, vector<1x48xf32>
    %cst_20 = arith.constant dense<0.000000e+00> : vector<8x48xf32>
    %30 = tpu.matmul %25, %26, %cst_20 {dimension_numbers = #tpu.dot_dimension_numbers<[1], [0], [0], [1], [0, 0, 1, 1], [], []>} : vector<8x64xf32>, vector<64x48xf32>, vector<8x48xf32> -> vector<8x48xf32>
    %31 = vector.broadcast %28 : vector<1x48xf32> to vector<8x48xf32>
    %32 = arith.addf %30, %31 : vector<8x48xf32>
    %cst_21 = arith.constant 0.000000e+00 : f32
    %33 = vector.broadcast %cst_21 : f32 to vector<2x16xf32>
    %cst_22 = arith.constant 0.000000e+00 : f32
    %34 = vector.broadcast %cst_22 : f32 to vector<2x16xf32>
    %35 = vector.extract_strided_slice %32 {offsets = [0, 0], sizes = [2, 48], strides = [1, 1]} : vector<8x48xf32> to vector<2x48xf32>
    %cst_23 = arith.constant dense<0.000000e+00> : vector<2x48xf32>
    %36 = tpu.matmul %33, %27, %cst_23 {dimension_numbers = #tpu.dot_dimension_numbers<[1], [0], [0], [1], [0, 0, 1, 1], [], []>} : vector<2x16xf32>, vector<16x48xf32>, vector<2x48xf32> -> vector<2x48xf32>
    %37 = vector.broadcast %29 : vector<1x48xf32> to vector<2x48xf32>
    %38 = arith.addf %36, %37 : vector<2x48xf32>
    %39 = vector.extract_strided_slice %35 {offsets = [0, 0], sizes = [2, 32], strides = [1, 1]} : vector<2x48xf32> to vector<2x32xf32>
    %40 = vector.extract_strided_slice %38 {offsets = [0, 0], sizes = [2, 32], strides = [1, 1]} : vector<2x48xf32> to vector<2x32xf32>
    %41 = arith.addf %39, %40 : vector<2x32xf32>
    %42 = arith.negf %41 : vector<2x32xf32>
    %43 = math.exp %42 : vector<2x32xf32>
    %cst_24 = arith.constant 1.000000e+00 : f32
    %44 = vector.broadcast %cst_24 : f32 to vector<2x32xf32>
    %45 = arith.addf %44, %43 : vector<2x32xf32>
    %46 = arith.divf %44, %45 : vector<2x32xf32>
    %47 = vector.extract_strided_slice %46 {offsets = [0, 0], sizes = [2, 16], strides = [1, 1]} : vector<2x32xf32> to vector<2x16xf32>
    %48 = vector.extract_strided_slice %46 {offsets = [0, 16], sizes = [2, 16], strides = [1, 1]} : vector<2x32xf32> to vector<2x16xf32>
    %49 = vector.extract_strided_slice %35 {offsets = [0, 32], sizes = [2, 16], strides = [1, 1]} : vector<2x48xf32> to vector<2x16xf32>
    %50 = vector.extract_strided_slice %38 {offsets = [0, 32], sizes = [2, 16], strides = [1, 1]} : vector<2x48xf32> to vector<2x16xf32>
    %51 = arith.mulf %47, %50 : vector<2x16xf32>
    %52 = arith.addf %49, %51 : vector<2x16xf32>
    %53 = math.tanh %52 : vector<2x16xf32>
    %cst_25 = arith.constant 1.000000e+00 : f32
    %54 = vector.broadcast %cst_25 : f32 to vector<2x16xf32>
    %55 = arith.subf %54, %48 : vector<2x16xf32>
    %56 = arith.mulf %55, %53 : vector<2x16xf32>
    %57 = arith.mulf %48, %33 : vector<2x16xf32>
    %58 = arith.addf %56, %57 : vector<2x16xf32>
    %59 = arith.addf %34, %58 : vector<2x16xf32>
    %60 = vector.extract_strided_slice %32 {offsets = [2, 0], sizes = [2, 48], strides = [1, 1]} : vector<8x48xf32> to vector<2x48xf32>
    %cst_26 = arith.constant dense<0.000000e+00> : vector<2x48xf32>
    %61 = tpu.matmul %58, %27, %cst_26 {dimension_numbers = #tpu.dot_dimension_numbers<[1], [0], [0], [1], [0, 0, 1, 1], [], []>} : vector<2x16xf32>, vector<16x48xf32>, vector<2x48xf32> -> vector<2x48xf32>
    %62 = vector.broadcast %29 : vector<1x48xf32> to vector<2x48xf32>
    %63 = arith.addf %61, %62 : vector<2x48xf32>
    %64 = vector.extract_strided_slice %60 {offsets = [0, 0], sizes = [2, 32], strides = [1, 1]} : vector<2x48xf32> to vector<2x32xf32>
    %65 = vector.extract_strided_slice %63 {offsets = [0, 0], sizes = [2, 32], strides = [1, 1]} : vector<2x48xf32> to vector<2x32xf32>
    %66 = arith.addf %64, %65 : vector<2x32xf32>
    %67 = arith.negf %66 : vector<2x32xf32>
    %68 = math.exp %67 : vector<2x32xf32>
    %cst_27 = arith.constant 1.000000e+00 : f32
    %69 = vector.broadcast %cst_27 : f32 to vector<2x32xf32>
    %70 = arith.addf %69, %68 : vector<2x32xf32>
    %71 = arith.divf %69, %70 : vector<2x32xf32>
    %72 = vector.extract_strided_slice %71 {offsets = [0, 0], sizes = [2, 16], strides = [1, 1]} : vector<2x32xf32> to vector<2x16xf32>
    %73 = vector.extract_strided_slice %71 {offsets = [0, 16], sizes = [2, 16], strides = [1, 1]} : vector<2x32xf32> to vector<2x16xf32>
    %74 = vector.extract_strided_slice %60 {offsets = [0, 32], sizes = [2, 16], strides = [1, 1]} : vector<2x48xf32> to vector<2x16xf32>
    %75 = vector.extract_strided_slice %63 {offsets = [0, 32], sizes = [2, 16], strides = [1, 1]} : vector<2x48xf32> to vector<2x16xf32>
    %76 = arith.mulf %72, %75 : vector<2x16xf32>
    %77 = arith.addf %74, %76 : vector<2x16xf32>
    %78 = math.tanh %77 : vector<2x16xf32>
    %cst_28 = arith.constant 1.000000e+00 : f32
    %79 = vector.broadcast %cst_28 : f32 to vector<2x16xf32>
    %80 = arith.subf %79, %73 : vector<2x16xf32>
    %81 = arith.mulf %80, %78 : vector<2x16xf32>
    %82 = arith.mulf %73, %58 : vector<2x16xf32>
    %83 = arith.addf %81, %82 : vector<2x16xf32>
    %84 = arith.addf %59, %83 : vector<2x16xf32>
    %85 = vector.extract_strided_slice %32 {offsets = [4, 0], sizes = [2, 48], strides = [1, 1]} : vector<8x48xf32> to vector<2x48xf32>
    %cst_29 = arith.constant dense<0.000000e+00> : vector<2x48xf32>
    %86 = tpu.matmul %83, %27, %cst_29 {dimension_numbers = #tpu.dot_dimension_numbers<[1], [0], [0], [1], [0, 0, 1, 1], [], []>} : vector<2x16xf32>, vector<16x48xf32>, vector<2x48xf32> -> vector<2x48xf32>
    %87 = vector.broadcast %29 : vector<1x48xf32> to vector<2x48xf32>
    %88 = arith.addf %86, %87 : vector<2x48xf32>
    %89 = vector.extract_strided_slice %85 {offsets = [0, 0], sizes = [2, 32], strides = [1, 1]} : vector<2x48xf32> to vector<2x32xf32>
    %90 = vector.extract_strided_slice %88 {offsets = [0, 0], sizes = [2, 32], strides = [1, 1]} : vector<2x48xf32> to vector<2x32xf32>
    %91 = arith.addf %89, %90 : vector<2x32xf32>
    %92 = arith.negf %91 : vector<2x32xf32>
    %93 = math.exp %92 : vector<2x32xf32>
    %cst_30 = arith.constant 1.000000e+00 : f32
    %94 = vector.broadcast %cst_30 : f32 to vector<2x32xf32>
    %95 = arith.addf %94, %93 : vector<2x32xf32>
    %96 = arith.divf %94, %95 : vector<2x32xf32>
    %97 = vector.extract_strided_slice %96 {offsets = [0, 0], sizes = [2, 16], strides = [1, 1]} : vector<2x32xf32> to vector<2x16xf32>
    %98 = vector.extract_strided_slice %96 {offsets = [0, 16], sizes = [2, 16], strides = [1, 1]} : vector<2x32xf32> to vector<2x16xf32>
    %99 = vector.extract_strided_slice %85 {offsets = [0, 32], sizes = [2, 16], strides = [1, 1]} : vector<2x48xf32> to vector<2x16xf32>
    %100 = vector.extract_strided_slice %88 {offsets = [0, 32], sizes = [2, 16], strides = [1, 1]} : vector<2x48xf32> to vector<2x16xf32>
    %101 = arith.mulf %97, %100 : vector<2x16xf32>
    %102 = arith.addf %99, %101 : vector<2x16xf32>
    %103 = math.tanh %102 : vector<2x16xf32>
    %cst_31 = arith.constant 1.000000e+00 : f32
    %104 = vector.broadcast %cst_31 : f32 to vector<2x16xf32>
    %105 = arith.subf %104, %98 : vector<2x16xf32>
    %106 = arith.mulf %105, %103 : vector<2x16xf32>
    %107 = arith.mulf %98, %83 : vector<2x16xf32>
    %108 = arith.addf %106, %107 : vector<2x16xf32>
    %109 = arith.addf %84, %108 : vector<2x16xf32>
    %110 = vector.extract_strided_slice %32 {offsets = [6, 0], sizes = [2, 48], strides = [1, 1]} : vector<8x48xf32> to vector<2x48xf32>
    %cst_32 = arith.constant dense<0.000000e+00> : vector<2x48xf32>
    %111 = tpu.matmul %108, %27, %cst_32 {dimension_numbers = #tpu.dot_dimension_numbers<[1], [0], [0], [1], [0, 0, 1, 1], [], []>} : vector<2x16xf32>, vector<16x48xf32>, vector<2x48xf32> -> vector<2x48xf32>
    %112 = vector.broadcast %29 : vector<1x48xf32> to vector<2x48xf32>
    %113 = arith.addf %111, %112 : vector<2x48xf32>
    %114 = vector.extract_strided_slice %110 {offsets = [0, 0], sizes = [2, 32], strides = [1, 1]} : vector<2x48xf32> to vector<2x32xf32>
    %115 = vector.extract_strided_slice %113 {offsets = [0, 0], sizes = [2, 32], strides = [1, 1]} : vector<2x48xf32> to vector<2x32xf32>
    %116 = arith.addf %114, %115 : vector<2x32xf32>
    %117 = arith.negf %116 : vector<2x32xf32>
    %118 = math.exp %117 : vector<2x32xf32>
    %cst_33 = arith.constant 1.000000e+00 : f32
    %119 = vector.broadcast %cst_33 : f32 to vector<2x32xf32>
    %120 = arith.addf %119, %118 : vector<2x32xf32>
    %121 = arith.divf %119, %120 : vector<2x32xf32>
    %122 = vector.extract_strided_slice %121 {offsets = [0, 0], sizes = [2, 16], strides = [1, 1]} : vector<2x32xf32> to vector<2x16xf32>
    %123 = vector.extract_strided_slice %121 {offsets = [0, 16], sizes = [2, 16], strides = [1, 1]} : vector<2x32xf32> to vector<2x16xf32>
    %124 = vector.extract_strided_slice %110 {offsets = [0, 32], sizes = [2, 16], strides = [1, 1]} : vector<2x48xf32> to vector<2x16xf32>
    %125 = vector.extract_strided_slice %113 {offsets = [0, 32], sizes = [2, 16], strides = [1, 1]} : vector<2x48xf32> to vector<2x16xf32>
    %126 = arith.mulf %122, %125 : vector<2x16xf32>
    %127 = arith.addf %124, %126 : vector<2x16xf32>
    %128 = math.tanh %127 : vector<2x16xf32>
    %cst_34 = arith.constant 1.000000e+00 : f32
    %129 = vector.broadcast %cst_34 : f32 to vector<2x16xf32>
    %130 = arith.subf %129, %123 : vector<2x16xf32>
    %131 = arith.mulf %130, %128 : vector<2x16xf32>
    %132 = arith.mulf %123, %108 : vector<2x16xf32>
    %133 = arith.addf %131, %132 : vector<2x16xf32>
    %134 = arith.addf %109, %133 : vector<2x16xf32>
    %cst_35 = arith.constant 2.500000e-01 : f32
    %135 = vector.broadcast %cst_35 : f32 to vector<2x16xf32>
    %136 = arith.mulf %134, %135 : vector<2x16xf32>
    %c0_36 = arith.constant 0 : index
    %c0_37 = arith.constant 0 : index
    %c0_38 = arith.constant 0 : index
    %137 = vector.load %arg6[%c0_36, %c0_37, %c0_38] : memref<1x2x16xf32, #tpu.memory_space<vmem>>, vector<1x2x16xf32>
    %138 = vector.shape_cast %137 : vector<1x2x16xf32> to vector<2x16xf32>
    %139 = vector.shape_cast %136 : vector<2x16xf32> to vector<1x2x16xf32>
    tpu.vector_store %arg6[%c0_36, %c0_37, %c0_38], %139 {strides = array<i32>} : memref<1x2x16xf32, #tpu.memory_space<vmem>>, vector<1x2x16xf32>,
    return
  }
  func.func @transform_0(%arg0: i32) -> (i32, i32, i32, i32) {
    %c0_i32 = arith.constant 0 : i32
    %c0_i32_0 = arith.constant 0 : i32
    %c0_i32_1 = arith.constant 0 : i32
    %c0_i32_2 = arith.constant 0 : i32
    return %c0_i32, %arg0, %c0_i32_0, %c0_i32_1 : i32, i32, i32, i32
  }
  func.func @transform_1(%arg0: i32) -> (i32, i32) {
    %c0_i32 = arith.constant 0 : i32
    %c0_i32_0 = arith.constant 0 : i32
    %c0_i32_1 = arith.constant 0 : i32
    return %c0_i32, %c0_i32_0 : i32, i32
  }
  func.func @transform_2(%arg0: i32) -> (i32, i32) {
    %c0_i32 = arith.constant 0 : i32
    %c0_i32_0 = arith.constant 0 : i32
    %c0_i32_1 = arith.constant 0 : i32
    return %c0_i32, %c0_i32_0 : i32, i32
  }
  func.func @transform_3(%arg0: i32) -> (i32, i32) {
    %c0_i32 = arith.constant 0 : i32
    %c0_i32_0 = arith.constant 0 : i32
    %c0_i32_1 = arith.constant 0 : i32
    return %c0_i32, %c0_i32_0 : i32, i32
  }
  func.func @transform_4(%arg0: i32) -> (i32, i32) {
    %c0_i32 = arith.constant 0 : i32
    %c0_i32_0 = arith.constant 0 : i32
    %c0_i32_1 = arith.constant 0 : i32
    return %c0_i32, %c0_i32_0 : i32, i32
  }
  func.func @transform_5(%arg0: i32) -> (i32, i32, i32) {
    %c0_i32 = arith.constant 0 : i32
    %c0_i32_0 = arith.constant 0 : i32
    %c0_i32_1 = arith.constant 0 : i32
    return %arg0, %c0_i32, %c0_i32_0 : i32, i32, i32
  }
}

</mosaic_0001>

<bundles_post_ra>
// kernel: tpu_custom_call.1
= control target key start
LH: loop header
LB: loop body
LE: loop exit
PB: predicated region body
PF: predicated region fallthrough
CT: control target
= control target key end

     0   :  { %10 = vsyncpa [#allocation3], 0  ;;  %s2636_s0 = inlined_call_operand.vmem [shape: f32[4,2,8,256], index: 0, kind: input, shape index: {}]   ;;  %s2637_s1 = inlined_call_operand.hbm [shape: f32[2048,128], index: 1, kind: input, shape index: {}]   ;;  %s2638_s2 = inlined_call_operand.vmem [shape: f32[1,128], index: 2, kind: input, shape index: {}]   ;;  %s2639_s3 = inlined_call_operand.vmem [shape: f32[80,48], index: 3, kind: input, shape index: {}]   ;;  %s2640_s4 = inlined_call_operand.vmem [shape: f32[2,48], index: 4, kind: input, shape index: {}]   ;;  %s2641_s5 = inlined_call_operand.hbm [shape: f32[1,2,16], index: 5, kind: output, shape index: {}]  }
   0x1   :  { %11 = vsyncpa [#allocation4], 0  ;;  %s18_s20 = sshll.u32 %s2637_s1, 4  ;;  %s2016_s21 = smov [#allocation2]   ;;  %s19_s20 = int_to_ptr.hbm [resolvable:$true] %s18_s20 }
   0x2   :  { %s20_s22 = sshll.u32 %s2016_s21, 4  ;;  %s2017_s23 = smov 128   ;;  %s21_s22 = int_to_ptr.vmem [resolvable:$true] %s20_s22 }
   0x3   :  { %s2018_s24 = smov 8  }
   0x4   :  { %26 = dma.hbm_to_vmem [thread:$0]  %s19_s20, 32768, %s21_s22, [#allocation3], %s2017_s23, %s2017_s23, %s2018_s24  }
   0x5   :  { %2012 = dma.done.wait [#allocation3], 32768  }
   0x6   :  { %2013 = vsyncadd [#allocation3], 4294934528  ;;  %v293_v0 = vld [vmem:[#allocation2 + $0x78] sm:$0xff]  ;;  %v292_v2 = vld [vmem:[#allocation2 + $0x70] sm:$0xff]  ;;  %vm2644_vm0 = vcmask 1047556   ;;  %s2022_s7 = smov 64  }
   0x7   :  { %v325_v1 = vld [vmem:[#allocation2 + $0x178] sm:$0xff]  ;;  %538 = vmatpush.msra.mxu0 %v293_v0  ;;  %v324_v4 = vld [vmem:[#allocation2 + $0x170] sm:$0xff]  ;;  %v291_v6 = vld [vmem:[#allocation2 + $0x68] sm:$0xff]  ;;  %s2023_s8 = smov 32   ;;  %s2024_s9 = smov 48   ;;  %vm2642_vm1 = vcmask 130048  }
   0x8   :  { %578 = vmatpush.msra.mxu2 %v325_v1  ;;  %v309_v3 = vld [vmem:[#allocation2 + $0xf8] sm:$0xff]  ;;  %v308_v7 = vld [vmem:[#allocation2 + $0xf0] sm:$0xff]  ;;  %v323_v8 = vld [vmem:[#allocation2 + $0x168] sm:$0xff]  ;;  %s2025_s10 = smov 16   ;;  %s2026_s11 = smov 96   ;;  %vm2643_vm2 = vcmask 64512  }
   0x9   :  { %v341_v5 = vld [vmem:[#allocation2 + $0x1f8] sm:$0xff]  ;;  %558 = vmatpush.msra.mxu1 %v309_v3  ;;  %539 = vmatpush.msra.mxu0 %v292_v2  ;;  %v340_v9 = vld [vmem:[#allocation2 + $0x1f0] sm:$0xff]  ;;  %v307_v10 = vld [vmem:[#allocation2 + $0xe8] sm:$0xff]  ;;  %s2027_s12 = smov 112   ;;  %vm1333_vm3 = vcmask 1041409   ;;  %vm1335_vm4 = vcmask 1042434  }
   0xa   :  { %598 = vmatpush.msra.mxu3 %v341_v5  ;;  %579 = vmatpush.msra.mxu2 %v324_v4  ;;  %v290_v11 = vld [vmem:[#allocation2 + $0x60] sm:$0xff]  ;;  %v339_v13 = vld [vmem:[#allocation2 + $0x1e8] sm:$0xff]  ;;  %v289_v16 = vld [vmem:[#allocation2 + $0x58] sm:$0xff]  ;;  %vm1337_vm5 = vcmask 1043459   ;;  %vm1339_vm6 = vcmask 1044484   ;;  %vm1341_vm7 = vcmask 1045509  }
   0xb   :  { %559 = vmatpush.msra.mxu1 %v308_v7  ;;  %v322_v12 = vld [vmem:[#allocation2 + $0x160] sm:$0xff]  ;;  %540 = vmatpush.msra.mxu0 %v291_v6  ;;  %v321_v17 = vld [vmem:[#allocation2 + $0x158] sm:$0xff]  ;;  %v288_v20 = vld [vmem:[#allocation2 + $0x50] sm:$0xff]  ;;  %vm1343_vm8 = vcmask 1046534   ;;  %vm1345_vm9 = vcmask 1047559   ;;  %s2028_s17 = smov 24  }
   0xc   :  { %599 = vmatpush.msra.mxu3 %v340_v9  ;;  %580 = vmatpush.msra.mxu2 %v323_v8  ;;  %v306_v14 = vld [vmem:[#allocation2 + $0xe0] sm:$0xff]  ;;  %v305_v18 = vld [vmem:[#allocation2 + $0xd8] sm:$0xff]  ;;  %v320_v21 = vld [vmem:[#allocation2 + $0x150] sm:$0xff]  ;;  %s2031_s18 = smov 40   ;;  %s1868_s15 = sshll.u32 %s2641_s5, 4  ;;  %s1869_s15 = int_to_ptr.hbm [resolvable:$true] %s1868_s15 }
   0xd   :  { %v338_v15 = vld [vmem:[#allocation2 + $0x1e0] sm:$0xff]  ;;  %560 = vmatpush.msra.mxu1 %v307_v10  ;;  %541 = vmatpush.msra.mxu0 %v290_v11  ;;  %v337_v19 = vld [vmem:[#allocation2 + $0x1d8] sm:$0xff]  ;;  %v304_v22 = vld [vmem:[#allocation2 + $0xd0] sm:$0xff] }
   0xe   :  { %600 = vmatpush.msra.mxu3 %v339_v13  ;;  %581 = vmatpush.msra.mxu2 %v322_v12  ;;  %v336_v23 = vld [vmem:[#allocation2 + $0x1d0] sm:$0xff]  ;;  %v287_v24 = vld [vmem:[#allocation2 + $0x48] sm:$0xff]  ;;  %v286_v28 = vld [vmem:[#allocation2 + $0x40] sm:$0xff] }
   0xf   :  { %561 = vmatpush.msra.mxu1 %v306_v14  ;;  %542 = vmatpush.msra.mxu0 %v289_v16  ;;  %v319_v25 = vld [vmem:[#allocation2 + $0x148] sm:$0xff]  ;;  %v318_v29 = vld [vmem:[#allocation2 + $0x140] sm:$0xff]  ;;  %v285_v32 = vld [vmem:[#allocation2 + $0x38] sm:$0xff] }
  0x10   :  { %601 = vmatpush.msra.mxu3 %v338_v15  ;;  %582 = vmatpush.msra.mxu2 %v321_v17  ;;  %v303_v26 = vld [vmem:[#allocation2 + $0xc8] sm:$0xff]  ;;  %v302_v30 = vld [vmem:[#allocation2 + $0xc0] sm:$0xff]  ;;  %v317_v33 = vld [vmem:[#allocation2 + $0x138] sm:$0xff] }
  0x11   :  { %562 = vmatpush.msra.mxu1 %v305_v18  ;;  %543 = vmatpush.msra.mxu0 %v288_v20  ;;  %v335_v27 = vld [vmem:[#allocation2 + $0x1c8] sm:$0xff]  ;;  %v334_v31 = vld [vmem:[#allocation2 + $0x1c0] sm:$0xff]  ;;  %v301_v34 = vld [vmem:[#allocation2 + $0xb8] sm:$0xff] }
  0x12   :  { %602 = vmatpush.msra.mxu3 %v337_v19  ;;  %583 = vmatpush.msra.mxu2 %v320_v21  ;;  %v333_v35 = vld [vmem:[#allocation2 + $0x1b8] sm:$0xff]  ;;  %v284_v36 = vld [vmem:[#allocation2 + $0x30] sm:$0xff]  ;;  %v283_v40 = vld [vmem:[#allocation2 + $0x28] sm:$0xff] }
  0x13   :  { %563 = vmatpush.msra.mxu1 %v304_v22  ;;  %544 = vmatpush.msra.mxu0 %v287_v24  ;;  %v316_v37 = vld [vmem:[#allocation2 + $0x130] sm:$0xff]  ;;  %v315_v41 = vld [vmem:[#allocation2 + $0x128] sm:$0xff]  ;;  %v282_v44 = vld [vmem:[#allocation2 + $0x20] sm:$0xff]  ;;  %v2019_v22 = vmov 1983009808  }
  0x14   :  { %603 = vmatpush.msra.mxu3 %v336_v23  ;;  %584 = vmatpush.msra.mxu2 %v319_v25  ;;  %v300_v38 = vld [vmem:[#allocation2 + $0xb0] sm:$0xff]  ;;  %v299_v42 = vld [vmem:[#allocation2 + $0xa8] sm:$0xff]  ;;  %v314_v45 = vld [vmem:[#allocation2 + $0x120] sm:$0xff]  ;;  %v59_v23 = vunpack.c.l.s4 %v2019_v22 }
  0x15   :  { %564 = vmatpush.msra.mxu1 %v303_v26  ;;  %545 = vmatpush.msra.mxu0 %v286_v28  ;;  %v332_v39 = vld [vmem:[#allocation2 + $0x1b0] sm:$0xff]  ;;  %v331_v43 = vld [vmem:[#allocation2 + $0x1a8] sm:$0xff]  ;;  %v298_v46 = vld [vmem:[#allocation2 + $0xa0] sm:$0xff] }
  0x16   :  { %604 = vmatpush.msra.mxu3 %v335_v27  ;;  %585 = vmatpush.msra.mxu2 %v318_v29  ;;  %v330_v47 = vld [vmem:[#allocation2 + $0x1a0] sm:$0xff]  ;;  %v281_v48 = vld [vmem:[#allocation2 + $0x18] sm:$0xff]  ;;  %v280_v52 = vld [vmem:[#allocation2 + $0x10] sm:$0xff] }
  0x17   :  { %565 = vmatpush.msra.mxu1 %v302_v30  ;;  %546 = vmatpush.msra.mxu0 %v285_v32  ;;  %v313_v49 = vld [vmem:[#allocation2 + $0x118] sm:$0xff]  ;;  %v312_v53 = vld [vmem:[#allocation2 + $0x110] sm:$0xff]  ;;  %v279_v56 = vld [vmem:[#allocation2 + $0x8] sm:$0xff] }
  0x18   :  { %605 = vmatpush.msra.mxu3 %v334_v31  ;;  %586 = vmatpush.msra.mxu2 %v317_v33  ;;  %v297_v50 = vld [vmem:[#allocation2 + $0x98] sm:$0xff]  ;;  %v296_v54 = vld [vmem:[#allocation2 + $0x90] sm:$0xff]  ;;  %v311_v57 = vld [vmem:[#allocation2 + $0x108] sm:$0xff] }
  0x19   :  { %566 = vmatpush.msra.mxu1 %v301_v34  ;;  %547 = vmatpush.msra.mxu0 %v284_v36  ;;  %v329_v51 = vld [vmem:[#allocation2 + $0x198] sm:$0xff]  ;;  %v328_v55 = vld [vmem:[#allocation2 + $0x190] sm:$0xff]  ;;  %v295_v58 = vld [vmem:[#allocation2 + $0x88] sm:$0xff] }
  0x1a   :  { %606 = vmatpush.msra.mxu3 %v333_v35  ;;  %587 = vmatpush.msra.mxu2 %v316_v37  ;;  %v327_v59 = vld [vmem:[#allocation2 + $0x188] sm:$0xff]  ;;  %v278_v60 = vld [vmem:[#allocation2] sm:$0xff]  ;;  %v357_v62 = vld [vmem:[#allocation2 + $0x278] sm:$0xff] }
  0x1b   :  { %567 = vmatpush.msra.mxu1 %v300_v38  ;;  %548 = vmatpush.msra.mxu0 %v283_v40  ;;  %v310_v61 = vld [vmem:[#allocation2 + $0x100] sm:$0xff]  ;;  %v389_v63 = vld [vmem:[#allocation2 + $0x378] sm:$0xff]  ;;  %v356_v2 = vld [vmem:[#allocation2 + $0x270] sm:$0xff]  ;;  %v2093_v40 = vunpack.c.0.s8 %v59_v23 }
  0x1c   :  { %607 = vmatpush.msra.mxu3 %v332_v39  ;;  %588 = vmatpush.msra.mxu2 %v315_v41  ;;  %v294_v0 = vld [vmem:[#allocation2 + $0x80] sm:$0xff]  ;;  %v373_v3 = vld [vmem:[#allocation2 + $0x2f8] sm:$0xff]  ;;  %v388_v4 = vld [vmem:[#allocation2 + $0x370] sm:$0xff] }
  0x1d   :  { %568 = vmatpush.msra.mxu1 %v299_v42  ;;  %549 = vmatpush.msra.mxu0 %v282_v44  ;;  %v326_v1 = vld [vmem:[#allocation2 + $0x180] sm:$0xff]  ;;  %v405_v5 = vld [vmem:[#allocation2 + $0x3f8] sm:$0xff]  ;;  %v355_v6 = vld [vmem:[#allocation2 + $0x268] sm:$0xff] }
  0x1e   :  { %608 = vmatpush.msra.mxu3 %v331_v43  ;;  %589 = vmatpush.msra.mxu2 %v314_v45  ;;  %v372_v7 = vld [vmem:[#allocation2 + $0x2f0] sm:$0xff]  ;;  %v387_v8 = vld [vmem:[#allocation2 + $0x368] sm:$0xff]  ;;  %v354_v10 = vld [vmem:[#allocation2 + $0x260] sm:$0xff]  ;;  %v2020_v45 = vmov 1934713408  }
  0x1f   :  { %569 = vmatpush.msra.mxu1 %v298_v46  ;;  %550 = vmatpush.msra.mxu0 %v281_v48  ;;  %v404_v9 = vld [vmem:[#allocation2 + $0x3f0] sm:$0xff]  ;;  %v371_v11 = vld [vmem:[#allocation2 + $0x2e8] sm:$0xff]  ;;  %v386_v12 = vld [vmem:[#allocation2 + $0x360] sm:$0xff]  ;;  %v107_v46 = vunpack.c.l.s4 %v2020_v45 }
  0x20   :  { %609 = vmatpush.msra.mxu3 %v330_v47  ;;  %590 = vmatpush.msra.mxu2 %v313_v49  ;;  %v403_v13 = vld [vmem:[#allocation2 + $0x3e8] sm:$0xff]  ;;  %v353_v14 = vld [vmem:[#allocation2 + $0x258] sm:$0xff]  ;;  %v370_v15 = vld [vmem:[#allocation2 + $0x2e0] sm:$0xff] }
  0x21   :  { %570 = vmatpush.msra.mxu1 %v297_v50  ;;  %551 = vmatpush.msra.mxu0 %v280_v52  ;;  %v385_v16 = vld [vmem:[#allocation2 + $0x358] sm:$0xff]  ;;  %v402_v17 = vld [vmem:[#allocation2 + $0x3e0] sm:$0xff]  ;;  %v352_v18 = vld [vmem:[#allocation2 + $0x250] sm:$0xff] }
  0x22   :  { %610 = vmatpush.msra.mxu3 %v329_v51  ;;  %591 = vmatpush.msra.mxu2 %v312_v53  ;;  %v369_v19 = vld [vmem:[#allocation2 + $0x2d8] sm:$0xff]  ;;  %v384_v20 = vld [vmem:[#allocation2 + $0x350] sm:$0xff]  ;;  %v351_v24 = vld [vmem:[#allocation2 + $0x248] sm:$0xff] }
  0x23   :  { %571 = vmatpush.msra.mxu1 %v296_v54  ;;  %552 = vmatpush.msra.mxu0 %v279_v56  ;;  %v401_v21 = vld [vmem:[#allocation2 + $0x3d8] sm:$0xff]  ;;  %v368_v25 = vld [vmem:[#allocation2 + $0x2d0] sm:$0xff]  ;;  %v383_v26 = vld [vmem:[#allocation2 + $0x348] sm:$0xff] }
  0x24   :  { %611 = vmatpush.msra.mxu3 %v328_v55  ;;  %592 = vmatpush.msra.mxu2 %v311_v57  ;;  %v400_v27 = vld [vmem:[#allocation2 + $0x3d0] sm:$0xff]  ;;  %v350_v28 = vld [vmem:[#allocation2 + $0x240] sm:$0xff]  ;;  %v367_v29 = vld [vmem:[#allocation2 + $0x2c8] sm:$0xff] }
  0x25   :  { %572 = vmatpush.msra.mxu1 %v295_v58  ;;  %553 = vmatpush.msra.mxu0 %v278_v60  ;;  %v382_v30 = vld [vmem:[#allocation2 + $0x340] sm:$0xff]  ;;  %v399_v31 = vld [vmem:[#allocation2 + $0x3c8] sm:$0xff]  ;;  %v349_v34 = vld [vmem:[#allocation2 + $0x238] sm:$0xff] }
  0x26   :  { %612 = vmatpush.msra.mxu3 %v327_v59  ;;  %593 = vmatpush.msra.mxu2 %v310_v61  ;;  %v2070_v32 = vld [vmem:[%s2636_s0] sm:$0xff]  ;;  %v2080_v36 = vld [vmem:[%s2636_s0 + $0x10] sm:$0xff]  ;;  %v381_v47 = vld [vmem:[#allocation2 + $0x338] sm:$0xff] }
  0x27   :  { %618 = vmatpush.msrb.mxu0 %v357_v62  ;;  %573 = vmatpush.msra.mxu1 %v294_v0  ;;  %v2075_v33 = vld [vmem:[%s2636_s0 + $0x20] sm:$0xff]  ;;  %v2085_v37 = vld [vmem:[%s2636_s0 + $0x30] sm:$0xff]  ;;  %v365_v53 = vld [vmem:[#allocation2 + $0x2b8] sm:$0xff] }
  0x28   :  { %658 = vmatpush.msrb.mxu2 %v389_v63  ;;  %613 = vmatpush.msra.mxu3 %v326_v1  ;;  %v366_v35 = vld [vmem:[#allocation2 + $0x2c0] sm:$0xff]  ;;  %v53_v39 = vrot.slane %v2075_v33, 4  ;;  %v2098_v41 = vld [vmem:[%s2636_s0 + $0x50] sm:$0xff]  ;;  %v66_v44 = vrot.slane %v2085_v37, 4  ;;  %v2123_v56 = vld [vmem:[%s2636_s0 + $0x8] sm:$0xff] }
  0x29   :  { %619 = vmatpush.msrb.mxu0 %v356_v2  ;;  %638 = vmatpush.msrb.mxu1 %v373_v3  ;;  %v2090_v38 = vld [vmem:[%s2636_s0 + $0x40] sm:$0xff]  ;;  %v2108_v43 = vld [vmem:[%s2636_s0 + $0x70] sm:$0xff]  ;;  %v2128_v57 = vld [vmem:[%s2636_s0 + $0x28] sm:$0xff]  ;;  %v2149_v3 = vunpack.c.0.s8 %v107_v46 }
  0x2a   :  { %659 = vmatpush.msrb.mxu2 %v388_v4  ;;  %678 = vmatpush.msrb.mxu3 %v405_v5  ;;  %v2103_v42 = vld [vmem:[%s2636_s0 + $0x60] sm:$0xff]  ;;  %v348_v49 = vld [vmem:[#allocation2 + $0x230] sm:$0xff]  ;;  %v55_v50 = vsel %vm2644_vm0, %v53_v39, %v2070_v32  ;;  %v90_v52 = vrot.slane %v2108_v43, 4  ;;  %v67_v55 = vsel %vm2644_vm0, %v66_v44, %v2080_v36  ;;  %v397_v59 = vld [vmem:[#allocation2 + $0x3b8] sm:$0xff]  ;;  %v166_v0 = vrot.slane %v2128_v57, 4 }
  0x2b   :  { %620 = vmatpush.msrb.mxu0 %v355_v6  ;;  %639 = vmatpush.msrb.mxu1 %v372_v7  ;;  %v398_v48 = vld [vmem:[#allocation2 + $0x3c0] sm:$0xff]  ;;  %v78_v51 = vrot.slane %v2103_v42, 4  ;;  %v2116_v54 = vperm.slane %v55_v50, %v2093_v40  ;;  %v380_v58 = vld [vmem:[#allocation2 + $0x330] sm:$0xff]  ;;  %v2131_v60 = vperm.slane %v67_v55, %v2093_v40  ;;  %v2140_v63 = vld [vmem:[%s2636_s0 + $0x38] sm:$0xff] }
  0x2c   :  { %660 = vmatpush.msrb.mxu2 %v387_v8  ;;  %679 = vmatpush.msrb.mxu3 %v404_v9  ;;  %v91_v62 = vsel %vm2644_vm0, %v90_v52, %v2098_v41  ;;  %v2154_v4 = vld [vmem:[%s2636_s0 + $0x18] sm:$0xff]  ;;  %v2159_v5 = vld [vmem:[%s2636_s0 + $0x68] sm:$0xff]  ;;  %v364_v8 = vld [vmem:[#allocation2 + $0x2b0] sm:$0xff] }
  0x2d   :  { %621 = vmatpush.msrb.mxu0 %v354_v10  ;;  %640 = vmatpush.msrb.mxu1 %v371_v11  ;;  %v79_v61 = vsel %vm2644_vm0, %v78_v51, %v2090_v38  ;;  %v2147_v2 = vperm.slane %v91_v62, %v2093_v40  ;;  %v2164_v6 = vld [vmem:[%s2636_s0 + $0x78] sm:$0xff]  ;;  %v347_v7 = vld [vmem:[#allocation2 + $0x228] sm:$0xff]  ;;  %v102_v10 = vrot.slane %v2131_v60, 4  ;;  %v167_v11 = vsel %vm2644_vm0, %v166_v0, %v2123_v56  ;;  %v394_v44 = vld [vmem:[#allocation2 + $0x3a0] sm:$0xff] }
  0x2e   :  { %661 = vmatpush.msrb.mxu2 %v386_v12  ;;  %680 = vmatpush.msrb.mxu3 %v403_v13  ;;  %v2144_v1 = vperm.slane %v79_v61, %v2093_v40  ;;  %v379_v9 = vld [vmem:[#allocation2 + $0x328] sm:$0xff]  ;;  %v178_v12 = vrot.slane %v2140_v63, 4  ;;  %v396_v13 = vld [vmem:[#allocation2 + $0x3b0] sm:$0xff]  ;;  %v202_v23 = vrot.slane %v2164_v6, 4  ;;  %v377_v39 = vld [vmem:[#allocation2 + $0x318] sm:$0xff]  ;;  %v104_v52 = vrot.slane %v2116_v54, 4 }
  0x2f   :  { %622 = vmatpush.msrb.mxu0 %v353_v14  ;;  %641 = vmatpush.msrb.mxu1 %v370_v15  ;;  %v126_v14 = vrot.slane %v2147_v2, 4  ;;  %v2174_v15 = vld [vmem:[%s2636_s0 + $0x48] sm:$0xff]  ;;  %v376_v50 = vld [vmem:[#allocation2 + $0x310] sm:$0xff]  ;;  %v393_v51 = vld [vmem:[#allocation2 + $0x398] sm:$0xff] }
  0x30   :  { %662 = vmatpush.msrb.mxu2 %v385_v16  ;;  %681 = vmatpush.msrb.mxu3 %v402_v17  ;;  %v2179_v16 = vld [vmem:[%s2636_s0 + $0x58] sm:$0xff]  ;;  %v190_v17 = vrot.slane %v2159_v5, 4  ;;  %v179_v22 = vsel %vm2644_vm0, %v178_v12, %v2154_v4 }
  0x31   :  { %623 = vmatpush.msrb.mxu0 %v352_v18  ;;  %642 = vmatpush.msrb.mxu1 %v369_v19  ;;  %v346_v18 = vld [vmem:[#allocation2 + $0x220] sm:$0xff]  ;;  %v363_v19 = vld [vmem:[#allocation2 + $0x2a8] sm:$0xff] }
  0x32   :  { %663 = vmatpush.msrb.mxu2 %v384_v20  ;;  %682 = vmatpush.msrb.mxu3 %v401_v21  ;;  %v103_v20 = vsel %vm2644_vm0, %v102_v10, %v2116_v54  ;;  %v2185_v21 = vperm.slane %v167_v11, %v2093_v40  ;;  %v342_v10 = vld [vmem:[#allocation2 + $0x200] sm:$0xff]  ;;  %v359_v11 = vld [vmem:[#allocation2 + $0x288] sm:$0xff] }
  0x33   :  { %624 = vmatpush.msrb.mxu0 %v351_v24  ;;  %643 = vmatpush.msrb.mxu1 %v368_v25  ;;  %v378_v24 = vld [vmem:[#allocation2 + $0x320] sm:$0xff]  ;;  %v395_v25 = vld [vmem:[#allocation2 + $0x3a8] sm:$0xff] }
  0x34   :  { %664 = vmatpush.msrb.mxu2 %v383_v26  ;;  %683 = vmatpush.msrb.mxu3 %v400_v27  ;;  %v109_v26 = vperm.slane %v103_v20, %v2149_v3  ;;  %v127_v27 = vsel %vm2644_vm0, %v126_v14, %v2144_v1  ;;  %v216_v12 = vrot.slane %v2185_v21, 4  ;;  %v374_v14 = vld [vmem:[#allocation2 + $0x300] sm:$0xff] }
  0x35   :  { %625 = vmatpush.msrb.mxu0 %v350_v28  ;;  %644 = vmatpush.msrb.mxu1 %v367_v29  ;;  %v2194_v28 = vperm.slane %v179_v22, %v2093_v40  ;;  %v345_v29 = vld [vmem:[#allocation2 + $0x218] sm:$0xff] }
  0x36   :  { %665 = vmatpush.msrb.mxu2 %v382_v30  ;;  %684 = vmatpush.msrb.mxu3 %v399_v31  ;;  %v362_v30 = vld [vmem:[#allocation2 + $0x2a0] sm:$0xff]  ;;  %v133_v31 = vperm.slane %v127_v27, %v2149_v3  ;;  %v152_v62 = vrot.slane %v109_v26, 4 }
  0x37   :  { %626 = vmatpush.msrb.mxu0 %v349_v34  ;;  %645 = vmatpush.msrb.mxu1 %v366_v35  ;;  %v191_v34 = vsel %vm2644_vm0, %v190_v17, %v2174_v15  ;;  %v203_v35 = vsel %vm2644_vm0, %v202_v23, %v2179_v16  ;;  %v391_v17 = vld [vmem:[#allocation2 + $0x388] sm:$0xff]  ;;  %v358_v27 = vld [vmem:[#allocation2 + $0x280] sm:$0xff] }
  0x38   :  { %666 = vmatpush.msrb.mxu2 %v381_v47  ;;  %685 = vmatpush.msrb.mxu3 %v398_v48  ;;  %v2202_v45 = vperm.slane %v191_v34, %v2093_v40  ;;  %v2205_v46 = vperm.slane %v203_v35, %v2093_v40  ;;  %v214_v47 = vrot.slane %v2194_v28, 4  ;;  %v344_v48 = vld [vmem:[#allocation2 + $0x210] sm:$0xff]  ;;  %v150_v61 = vrot.slane %v133_v31, 4  ;;  %v437_v35 = vld [vmem:[#allocation2 + $0x4f8] sm:$0xff] }
  0x39   :  { %627 = vmatpush.msrb.mxu0 %v348_v49  ;;  %646 = vmatpush.msrb.mxu1 %v365_v53  ;;  %v361_v49 = vld [vmem:[#allocation2 + $0x298] sm:$0xff]  ;;  %v153_v20 = vsel %vm2644_vm0, %v133_v31, %v152_v62  ;;  %v420_v34 = vld [vmem:[#allocation2 + $0x470] sm:$0xff] }
  0x3a   :  { %667 = vmatpush.msrb.mxu2 %v380_v58  ;;  %686 = vmatpush.msrb.mxu3 %v397_v59  ;;  %v215_v53 = vsel %vm2644_vm0, %v214_v47, %v2185_v21  ;;  %v238_v55 = vrot.slane %v2205_v46, 4  ;;  %v343_v58 = vld [vmem:[#allocation2 + $0x208] sm:$0xff]  ;;  %v360_v59 = vld [vmem:[#allocation2 + $0x290] sm:$0xff]  ;;  %v240_v23 = vrot.slane %v2202_v45, 4  ;;  %v421_v21 = vld [vmem:[#allocation2 + $0x478] sm:$0xff] }
  0x3b   :  { %628 = vmatpush.msrb.mxu0 %v347_v7  ;;  %647 = vmatpush.msrb.mxu1 %v364_v8  ;;  %v221_v0 = vperm.slane %v215_v53, %v2149_v3  ;;  %v375_v7 = vld [vmem:[#allocation2 + $0x308] sm:$0xff]  ;;  %v392_v8 = vld [vmem:[#allocation2 + $0x390] sm:$0xff]  ;;  %v68_v53 = vrot.slane %v2080_v36, 4  ;;  %v434_v36 = vld [vmem:[#allocation2 + $0x4e0] sm:$0xff] }
  0x3c   :  { %668 = vmatpush.msrb.mxu2 %v379_v9  ;;  %687 = vmatpush.msrb.mxu3 %v396_v13  ;;  %v239_v54 = vsel %vm2644_vm0, %v238_v55, %v2202_v45  ;;  %v128_v9 = vrot.slane %v2144_v1, 4  ;;  %v151_v1 = vsel %vm2644_vm0, %v150_v61, %v109_v26  ;;  %v217_v26 = vsel %vm2644_vm0, %v2194_v28, %v216_v12  ;;  %v469_v45 = vld [vmem:[#allocation2 + $0x5f8] sm:$0xff]  ;;  %v419_v47 = vld [vmem:[#allocation2 + $0x468] sm:$0xff] }
  0x3d   :  { %629 = vmatpush.msrb.mxu0 %v346_v18  ;;  %648 = vmatpush.msrb.mxu1 %v363_v19  ;;  %v245_v13 = vperm.slane %v239_v54, %v2149_v3  ;;  %v264_v18 = vrot.slane %v221_v0, 4  ;;  %v105_v19 = vsel %vm2644_vm0, %v2131_v60, %v104_v52  ;;  %v390_v60 = vld [vmem:[#allocation2 + $0x380] sm:$0xff]  ;;  %v225_v28 = vperm.slane %v217_v26, %v2149_v3  ;;  %v435_v55 = vld [vmem:[#allocation2 + $0x4e8] sm:$0xff]  ;;  %v449_v54 = vld [vmem:[#allocation2 + $0x558] sm:$0xff] }
  0x3e   :  { %669 = vmatpush.msrb.mxu2 %v378_v24  ;;  %688 = vmatpush.msrb.mxu3 %v395_v25  ;;  %v453_v24 = vld [vmem:[#allocation2 + $0x578] sm:$0xff]  ;;  %v129_v25 = vsel %vm2644_vm0, %v2147_v2, %v128_v9  ;;  %v467_v61 = vld [vmem:[#allocation2 + $0x5e8] sm:$0xff]  ;;  %v446_v26 = vld [vmem:[#allocation2 + $0x540] sm:$0xff] }
  0x3f   :  { %630 = vmatpush.msrb.mxu0 %v345_v29  ;;  %649 = vmatpush.msrb.mxu1 %v362_v30  ;;  %v262_v22 = vrot.slane %v245_v13, 4  ;;  %v113_v29 = vperm.slane %v105_v19, %v2149_v3  ;;  %v265_v31 = vsel %vm2644_vm0, %v245_v13, %v264_v18  ;;  %v137_v2 = vperm.slane %v129_v25, %v2149_v3  ;;  %v464_v25 = vld [vmem:[#allocation2 + $0x5d0] sm:$0xff] }
  0x40   :  { %670 = vmatpush.msrb.mxu2 %v377_v39  ;;  %689 = vmatpush.msrb.mxu3 %v394_v44  ;;  %v241_v39 = vsel %vm2644_vm0, %v2205_v46, %v240_v23  ;;  %v452_v44 = vld [vmem:[#allocation2 + $0x570] sm:$0xff]  ;;  %v418_v46 = vld [vmem:[#allocation2 + $0x460] sm:$0xff]  ;;  %v268_v62 = vrot.slane %v225_v28, 4  ;;  %v180_v13 = vrot.slane %v2154_v4, 4  ;;  %v69_v18 = vsel %vm2644_vm0, %v2085_v37, %v68_v53  ;;  %v465_v4 = vld [vmem:[#allocation2 + $0x5d8] sm:$0xff] }
  0x41   :  { %631 = vmatpush.msrb.mxu0 %v344_v48  ;;  %650 = vmatpush.msrb.mxu1 %v361_v49  ;;  %v263_v30 = vsel %vm2644_vm0, %v262_v22, %v221_v0  ;;  %v436_v48 = vld [vmem:[#allocation2 + $0x4f0] sm:$0xff]  ;;  %v156_v49 = vrot.slane %v113_v29, 4  ;;  %v249_v52 = vperm.slane %v241_v39, %v2149_v3  ;;  %v92_v0 = vrot.slane %v2098_v41, 4  ;;  %v415_v23 = vld [vmem:[#allocation2 + $0x448] sm:$0xff]  ;;  %v445_v39 = vld [vmem:[#allocation2 + $0x538] sm:$0xff] }
  0x42   :  { %671 = vmatpush.msrb.mxu2 %v376_v50  ;;  %690 = vmatpush.msrb.mxu3 %v393_v51  ;;  %v451_v50 = vld [vmem:[#allocation2 + $0x568] sm:$0xff]  ;;  %v468_v51 = vld [vmem:[#allocation2 + $0x5f0] sm:$0xff]  ;;  %v204_v41 = vrot.slane %v2179_v16, 4  ;;  %v80_v19 = vrot.slane %v2090_v38, 4  ;;  %v168_v22 = vrot.slane %v2123_v56, 4  ;;  %v181_v56 = vsel %vm2644_vm0, %v2140_v63, %v180_v13  ;;  %v413_v63 = vld [vmem:[#allocation2 + $0x438] sm:$0xff] }
  0x43   :  { %632 = vmatpush.msrb.mxu0 %v343_v58  ;;  %651 = vmatpush.msrb.mxu1 %v360_v59  ;;  %v450_v58 = vld [vmem:[#allocation2 + $0x560] sm:$0xff]  ;;  %v154_v59 = vrot.slane %v137_v2, 4  ;;  %v266_v9 = vrot.slane %v249_v52, 4  ;;  %v432_v37 = vld [vmem:[#allocation2 + $0x4d0] sm:$0xff] }
  0x44   :  { %672 = vmatpush.msrb.mxu2 %v375_v7  ;;  %691 = vmatpush.msrb.mxu3 %v392_v8  ;;  %v157_v7 = vsel %vm2644_vm0, %v137_v2, %v156_v49  ;;  %v417_v8 = vld [vmem:[#allocation2 + $0x458] sm:$0xff]  ;;  %v2272_v2 = vperm.slane %v181_v56, %v2093_v40  ;;  %v444_v49 = vld [vmem:[#allocation2 + $0x530] sm:$0xff]  ;;  %v455_v56 = vld [vmem:[#allocation2 + $0x588] sm:$0xff] }
  0x45   :  { %633 = vmatpush.msrb.mxu0 %v342_v10  ;;  %652 = vmatpush.msrb.mxu1 %v359_v11  ;;  %v56_v10 = vrot.slane %v2070_v32, 4  ;;  %v466_v11 = vld [vmem:[#allocation2 + $0x5e0] sm:$0xff]  ;;  %v155_v12 = vsel %vm2644_vm0, %v154_v59, %v113_v29  ;;  %v433_v32 = vld [vmem:[#allocation2 + $0x4d8] sm:$0xff]  ;;  %v267_v16 = vsel %vm2644_vm0, %v266_v9, %v225_v28  ;;  %v431_v29 = vld [vmem:[#allocation2 + $0x4c8] sm:$0xff] }
  0x46   :  { %673 = vmatpush.msrb.mxu2 %v374_v14  ;;  %692 = vmatpush.msrb.mxu3 %v391_v17  ;;  %v269_v14 = vsel %vm2644_vm0, %v249_v52, %v268_v62  ;;  %v416_v17 = vld [vmem:[#allocation2 + $0x450] sm:$0xff]  ;;  %v411_v52 = vld [vmem:[#allocation2 + $0x428] sm:$0xff]  ;;  %v409_v9 = vld [vmem:[#allocation2 + $0x418] sm:$0xff] }
  0x47   :  { %554 = vmatmul.f32.vlgmr.msra.gmra.mxu0 %v151_v1  ;;  %594 = vmatmul.f32.vlgmr.msra.gmra.mxu2 %v153_v20  ;;  %v448_v1 = vld [vmem:[#allocation2 + $0x550] sm:$0xff]  ;;  %v93_v20 = vsel %vm2644_vm0, %v2108_v43, %v92_v0  ;;  %v57_v38 = vsel %vm2644_vm0, %v2075_v33, %v56_v10  ;;  %v447_v43 = vld [vmem:[#allocation2 + $0x548] sm:$0xff]  ;;  %v414_v33 = vld [vmem:[#allocation2 + $0x440] sm:$0xff] }
  0x48   :  { %698 = vmatpush.msra.mxu0 %v421_v21  ;;  %738 = vmatpush.msra.mxu2 %v453_v24  ;;  %v2253_v21 = vperm.slane %v69_v18, %v2093_v40  ;;  %v192_v24 = vrot.slane %v2174_v15, 4  ;;  %v81_v15 = vsel %vm2644_vm0, %v2103_v42, %v80_v19  ;;  %v428_v53 = vld [vmem:[#allocation2 + $0x4b0] sm:$0xff]  ;;  %v443_v59 = vld [vmem:[#allocation2 + $0x528] sm:$0xff]  ;;  %v410_v0 = vld [vmem:[#allocation2 + $0x420] sm:$0xff] }
  0x49   :  { %653 = vmatpush.msrb.mxu1 %v358_v27  ;;  %693 = vmatpush.msrb.mxu3 %v390_v60  ;;  %v2257_v27 = vperm.slane %v93_v20, %v2093_v40  ;;  %v205_v60 = vsel %vm2644_vm0, %v2164_v6, %v204_v41  ;;  %v426_v10 = vld [vmem:[#allocation2 + $0x4a0] sm:$0xff]  ;;  %v441_v41 = vld [vmem:[#allocation2 + $0x518] sm:$0xff]  ;;  %v440_v19 = vld [vmem:[#allocation2 + $0x510] sm:$0xff] }
  0x4a   :  { %574 = vmatmul.f32.vlgmr.msra.gmra.mxu1 %v263_v30  ;;  %614 = vmatmul.f32.vlgmr.msra.gmra.mxu3 %v265_v31  ;;  %v463_v30 = vld [vmem:[#allocation2 + $0x5c8] sm:$0xff]  ;;  %v2266_v31 = vperm.slane %v57_v38, %v2093_v40  ;;  %v114_v6 = vrot.slane %v2253_v21, 4  ;;  %v2275_v42 = vperm.slane %v205_v60, %v2093_v40  ;;  %v425_v18 = vld [vmem:[#allocation2 + $0x498] sm:$0xff]  ;;  %v456_v38 = vld [vmem:[#allocation2 + $0x590] sm:$0xff] }
  0x4b   :  { %699 = vmatpush.msra.mxu0 %v420_v34  ;;  %718 = vmatpush.msra.mxu1 %v437_v35  ;;  %v430_v34 = vld [vmem:[#allocation2 + $0x4c0] sm:$0xff]  ;;  %v169_v35 = vsel %vm2644_vm0, %v2128_v57, %v168_v22  ;;  %v138_v28 = vrot.slane %v2257_v27, 4  ;;  %v412_v57 = vld [vmem:[#allocation2 + $0x430] sm:$0xff] }
  0x4c   :  { %739 = vmatpush.msra.mxu2 %v452_v44  ;;  %758 = vmatpush.msra.mxu3 %v469_v45  ;;  %v462_v44 = vld [vmem:[#allocation2 + $0x5c0] sm:$0xff]  ;;  %v2278_v45 = vperm.slane %v81_v15, %v2093_v40 }
  0x4d   :  { %700 = vmatpush.msra.mxu0 %v419_v47  ;;  %719 = vmatpush.msra.mxu1 %v436_v48  ;;  %v193_v47 = vsel %vm2644_vm0, %v2159_v5, %v192_v24  ;;  %v429_v48 = vld [vmem:[#allocation2 + $0x4b8] sm:$0xff]  ;;  %v406_v24 = vld [vmem:[#allocation2 + $0x400] sm:$0xff] }
  0x4e   :  { %740 = vmatpush.msra.mxu2 %v451_v50  ;;  %759 = vmatpush.msra.mxu3 %v468_v51  ;;  %v461_v50 = vld [vmem:[#allocation2 + $0x5b8] sm:$0xff]  ;;  %v2284_v51 = vperm.slane %v169_v35, %v2093_v40  ;;  %v2289_v5 = vperm.slane %v193_v47, %v2093_v40  ;;  %v139_v62 = vsel %vm2644_vm0, %v138_v28, %v2278_v45  ;;  %v516_v28 = vld [vmem:[#allocation2 + $0x770] sm:$0xff] }
  0x4f   :  { %701 = vmatpush.msra.mxu0 %v418_v46  ;;  %720 = vmatpush.msra.mxu1 %v435_v55  ;;  %v115_v46 = vsel %vm2644_vm0, %v114_v6, %v2266_v31  ;;  %v226_v55 = vrot.slane %v2272_v2, 4  ;;  %v533_v47 = vld [vmem:[#allocation2 + $0x7f8] sm:$0xff] }
  0x50   :  { %741 = vmatpush.msra.mxu2 %v450_v58  ;;  %760 = vmatpush.msra.mxu3 %v467_v61  ;;  %v250_v58 = vrot.slane %v2275_v42, 4  ;;  %v460_v61 = vld [vmem:[#allocation2 + $0x5b0] sm:$0xff] }
  0x51   :  { %674 = vmatmul.f32.vlgmr.msrb.gmra.mxu2 %v157_v7  ;;  %702 = vmatpush.msra.mxu0 %v417_v8  ;;  %v427_v7 = vld [vmem:[#allocation2 + $0x4a8] sm:$0xff]  ;;  %v442_v8 = vld [vmem:[#allocation2 + $0x520] sm:$0xff] }
  0x52   :  { %721 = vmatpush.msra.mxu1 %v434_v36  ;;  %742 = vmatpush.msra.mxu2 %v449_v54  ;;  %v459_v36 = vld [vmem:[#allocation2 + $0x5a8] sm:$0xff]  ;;  %v121_v54 = vperm.slane %v115_v46, %v2149_v3  ;;  %v251_v13 = vsel %vm2644_vm0, %v250_v58, %v2289_v5  ;;  %v514_v46 = vld [vmem:[#allocation2 + $0x760] sm:$0xff]  ;;  %v481_v58 = vld [vmem:[#allocation2 + $0x658] sm:$0xff] }
  0x53   :  { %761 = vmatpush.msra.mxu3 %v466_v11  ;;  %634 = vmatmul.f32.vlgmr.msrb.gmra.mxu0 %v155_v12  ;;  %v145_v11 = vperm.slane %v139_v62, %v2149_v3  ;;  %v227_v12 = vsel %vm2644_vm0, %v226_v55, %v2284_v51  ;;  %v257_v20 = vperm.slane %v251_v13, %v2149_v3  ;;  %v531_v55 = vld [vmem:[#allocation2 + $0x7e8] sm:$0xff]  ;;  %v530_v62 = vld [vmem:[#allocation2 + $0x7e0] sm:$0xff] }
  0x54   :  { %694 = vmatmul.f32.vlgmr.msrb.gmra.mxu3 %v269_v14  ;;  %703 = vmatpush.msra.mxu0 %v416_v17  ;;  %v458_v14 = vld [vmem:[#allocation2 + $0x5a0] sm:$0xff]  ;;  %v408_v17 = vld [vmem:[#allocation2 + $0x410] sm:$0xff]  ;;  %v495_v13 = vld [vmem:[#allocation2 + $0x6c8] sm:$0xff] }
  0x55   :  { %722 = vmatpush.msra.mxu1 %v433_v32  ;;  %743 = vmatpush.msra.mxu2 %v448_v1  ;;  %v457_v32 = vld [vmem:[#allocation2 + $0x598] sm:$0xff]  ;;  %v233_v1 = vperm.slane %v227_v12, %v2149_v3  ;;  %v158_v22 = vrot.slane %v145_v11, 4  ;;  %v270_v60 = vrot.slane %v257_v20, 4  ;;  %v478_v12 = vld [vmem:[#allocation2 + $0x640] sm:$0xff] }
  0x56   :  { %762 = vmatpush.msra.mxu3 %v465_v4  ;;  %654 = vmatmul.f32.vlgmr.msrb.gmra.mxu1 %v267_v16  ;;  %v407_v4 = vld [vmem:[#allocation2 + $0x408] sm:$0xff]  ;;  %v424_v16 = vld [vmem:[#allocation2 + $0x490] sm:$0xff] }
  0x57   :  { %704 = vmatpush.msra.mxu0 %v415_v23  ;;  %723 = vmatpush.msra.mxu1 %v432_v37  ;;  %v160_v23 = vrot.slane %v121_v54, 4  ;;  %v439_v37 = vld [vmem:[#allocation2 + $0x508] sm:$0xff]  ;;  %v271_v6 = vsel %vm2644_vm0, %v270_v60, %v233_v1  ;;  %v474_v60 = vld [vmem:[#allocation2 + $0x620] sm:$0xff] }
  0x58   :  { %744 = vmatpush.msra.mxu2 %v447_v43  ;;  %763 = vmatpush.msra.mxu3 %v464_v25  ;;  %v423_v43 = vld [vmem:[#allocation2 + $0x488] sm:$0xff]  ;;  %v438_v25 = vld [vmem:[#allocation2 + $0x500] sm:$0xff] }
  0x59   :  { %705 = vmatpush.msra.mxu0 %v414_v33  ;;  %724 = vmatpush.msra.mxu1 %v431_v29  ;;  %v272_v33 = vrot.slane %v233_v1, 4  ;;  %v159_v29 = vsel %vm2644_vm0, %v158_v22, %v121_v54  ;;  %v161_v15 = vsel %vm2644_vm0, %v145_v11, %v160_v23  ;;  %v479_v54 = vld [vmem:[#allocation2 + $0x648] sm:$0xff]  ;;  %v528_v11 = vld [vmem:[#allocation2 + $0x7d0] sm:$0xff]  ;;  %v116_v1 = vrot.slane %v2266_v31, 4  ;;  %v525_v23 = vld [vmem:[#allocation2 + $0x7b8] sm:$0xff] }
  0x5a   :  { %745 = vmatpush.msra.mxu2 %v446_v26  ;;  %764 = vmatpush.msra.mxu3 %v463_v30  ;;  %v485_v26 = vld [vmem:[#allocation2 + $0x678] sm:$0xff]  ;;  %v508_v22 = vld [vmem:[#allocation2 + $0x730] sm:$0xff]  ;;  %v507_v31 = vld [vmem:[#allocation2 + $0x728] sm:$0xff] }
  0x5b   :  { %706 = vmatpush.msra.mxu0 %v413_v63  ;;  %725 = vmatpush.msra.mxu1 %v430_v34  ;;  %v517_v30 = vld [vmem:[#allocation2 + $0x778] sm:$0xff]  ;;  %v422_v63 = vld [vmem:[#allocation2 + $0x480] sm:$0xff]  ;;  %v273_v35 = vsel %vm2644_vm0, %v257_v20, %v272_v33  ;;  %v140_v20 = vrot.slane %v2278_v45, 4  ;;  %v524_v45 = vld [vmem:[#allocation2 + $0x7b0] sm:$0xff] }
  0x5c   :  { %746 = vmatpush.msra.mxu2 %v445_v39  ;;  %765 = vmatpush.msra.mxu3 %v462_v44  ;;  %v454_v34 = vld [vmem:[#allocation2 + $0x580] sm:$0xff]  ;;  %v484_v39 = vld [vmem:[#allocation2 + $0x670] sm:$0xff]  ;;  %v501_v44 = vld [vmem:[#allocation2 + $0x6f8] sm:$0xff] }
  0x5d   :  { %707 = vmatpush.msra.mxu0 %v412_v57  ;;  %726 = vmatpush.msra.mxu1 %v429_v48  ;;  %v483_v57 = vld [vmem:[#allocation2 + $0x668] sm:$0xff]  ;;  %v500_v48 = vld [vmem:[#allocation2 + $0x6f0] sm:$0xff] }
  0x5e   :  { %747 = vmatpush.msra.mxu2 %v444_v49  ;;  %766 = vmatpush.msra.mxu3 %v461_v50  ;;  %v515_v49 = vld [vmem:[#allocation2 + $0x768] sm:$0xff]  ;;  %v532_v50 = vld [vmem:[#allocation2 + $0x7f0] sm:$0xff] }
  0x5f   :  { %708 = vmatpush.msra.mxu0 %v411_v52  ;;  %727 = vmatpush.msra.mxu1 %v428_v53  ;;  %v482_v52 = vld [vmem:[#allocation2 + $0x660] sm:$0xff]  ;;  %v499_v53 = vld [vmem:[#allocation2 + $0x6e8] sm:$0xff] }
  0x60   :  { %748 = vmatpush.msra.mxu2 %v443_v59  ;;  %767 = vmatpush.msra.mxu3 %v460_v61  ;;  %v498_v59 = vld [vmem:[#allocation2 + $0x6e0] sm:$0xff]  ;;  %v513_v61 = vld [vmem:[#allocation2 + $0x758] sm:$0xff]  ;;  %v523_v33 = vld [vmem:[#allocation2 + $0x7a8] sm:$0xff] }
  0x61   :  { %709 = vmatpush.msra.mxu0 %v410_v0  ;;  %728 = vmatpush.msra.mxu1 %v427_v7  ;;  %v480_v0 = vld [vmem:[#allocation2 + $0x650] sm:$0xff]  ;;  %v497_v7 = vld [vmem:[#allocation2 + $0x6d8] sm:$0xff] }
  0x62   :  { %749 = vmatpush.msra.mxu2 %v442_v8  ;;  %768 = vmatpush.msra.mxu3 %v459_v36  ;;  %v512_v8 = vld [vmem:[#allocation2 + $0x750] sm:$0xff]  ;;  %v529_v36 = vld [vmem:[#allocation2 + $0x7d8] sm:$0xff] }
  0x63   :  { %710 = vmatpush.msra.mxu0 %v409_v9  ;;  %729 = vmatpush.msra.mxu1 %v426_v10  ;;  %v496_v9 = vld [vmem:[#allocation2 + $0x6d0] sm:$0xff]  ;;  %v511_v10 = vld [vmem:[#allocation2 + $0x748] sm:$0xff] }
  0x64   :  { %750 = vmatpush.msra.mxu2 %v441_v41  ;;  %769 = vmatpush.msra.mxu3 %v458_v14  ;;  %v510_v41 = vld [vmem:[#allocation2 + $0x740] sm:$0xff]  ;;  %v527_v14 = vld [vmem:[#allocation2 + $0x7c8] sm:$0xff] }
  0x65   :  { %711 = vmatpush.msra.mxu0 %v408_v17  ;;  %730 = vmatpush.msra.mxu1 %v425_v18  ;;  %v477_v17 = vld [vmem:[#allocation2 + $0x638] sm:$0xff]  ;;  %v494_v18 = vld [vmem:[#allocation2 + $0x6c0] sm:$0xff] }
  0x66   :  { %751 = vmatpush.msra.mxu2 %v440_v19  ;;  %770 = vmatpush.msra.mxu3 %v457_v32  ;;  %v509_v19 = vld [vmem:[#allocation2 + $0x738] sm:$0xff]  ;;  %v526_v32 = vld [vmem:[#allocation2 + $0x7c0] sm:$0xff] }
  0x67   :  { %712 = vmatpush.msra.mxu0 %v407_v4  ;;  %731 = vmatpush.msra.mxu1 %v424_v16  ;;  %v476_v4 = vld [vmem:[#allocation2 + $0x630] sm:$0xff]  ;;  %v493_v16 = vld [vmem:[#allocation2 + $0x6b8] sm:$0xff] }
  0x68   :  { %752 = vmatpush.msra.mxu2 %v439_v37  ;;  %771 = vmatpush.msra.mxu3 %v456_v38  ;;  %v228_v37 = vrot.slane %v2284_v51, 4  ;;  %v252_v38 = vrot.slane %v2289_v5, 4  ;;  %v491_v51 = vld [vmem:[#allocation2 + $0x6a8] sm:$0xff]  ;;  %v506_v5 = vld [vmem:[#allocation2 + $0x720] sm:$0xff] }
  0x69   :  { %713 = vmatpush.msra.mxu0 %v406_v24  ;;  %732 = vmatpush.msra.mxu1 %v423_v43  ;;  %v475_v24 = vld [vmem:[#allocation2 + $0x628] sm:$0xff]  ;;  %v492_v43 = vld [vmem:[#allocation2 + $0x6b0] sm:$0xff] }
  0x6a   :  { %753 = vmatpush.msra.mxu2 %v438_v25  ;;  %772 = vmatpush.msra.mxu3 %v455_v56  ;;  %v117_v25 = vsel %vm2644_vm0, %v2253_v21, %v116_v1  ;;  %v141_v56 = vsel %vm2644_vm0, %v2257_v27, %v140_v20  ;;  %v473_v21 = vld [vmem:[#allocation2 + $0x618] sm:$0xff] }
  0x6b   :  { %714 = vmatmul.f32.vlgmr.msra.gmra.mxu0 %v159_v29  ;;  %754 = vmatmul.f32.vlgmr.msra.gmra.mxu2 %v161_v15  ;;  %v229_v29 = vsel %vm2644_vm0, %v2272_v2, %v228_v37  ;;  %v253_v15 = vsel %vm2644_vm0, %v2275_v42, %v252_v38  ;;  %v125_v27 = vperm.slane %v117_v25, %v2149_v3 }
  0x6c   :  { %778 = vmatpush.msrb.mxu0 %v485_v26  ;;  %818 = vmatpush.msrb.mxu2 %v517_v30  ;;  %v490_v26 = vld [vmem:[#allocation2 + $0x6a0] sm:$0xff]  ;;  %v149_v30 = vperm.slane %v141_v56, %v2149_v3  ;;  %v237_v2 = vperm.slane %v229_v29, %v2149_v3  ;;  %v261_v42 = vperm.slane %v253_v15, %v2149_v3 }
  0x6d   :  { %733 = vmatpush.msra.mxu1 %v422_v63  ;;  %773 = vmatpush.msra.mxu3 %v454_v34  ;;  %v505_v63 = vld [vmem:[#allocation2 + $0x718] sm:$0xff]  ;;  %v522_v34 = vld [vmem:[#allocation2 + $0x7a0] sm:$0xff] }
  0x6e   :  { %734 = vmatmul.f32.vlgmr.msra.gmra.mxu1 %v271_v6  ;;  %774 = vmatmul.f32.vlgmr.msra.gmra.mxu3 %v273_v35  ;;  %v472_v6 = vld [vmem:[#allocation2 + $0x610] sm:$0xff]  ;;  %v489_v35 = vld [vmem:[#allocation2 + $0x698] sm:$0xff] }
  0x6f   :  { %779 = vmatpush.msrb.mxu0 %v484_v39  ;;  %798 = vmatpush.msrb.mxu1 %v501_v44  ;;  %v504_v39 = vld [vmem:[#allocation2 + $0x710] sm:$0xff]  ;;  %v521_v44 = vld [vmem:[#allocation2 + $0x798] sm:$0xff] }
  0x70   :  { %819 = vmatpush.msrb.mxu2 %v516_v28  ;;  %838 = vmatpush.msrb.mxu3 %v533_v47  ;;  %v471_v28 = vld [vmem:[#allocation2 + $0x608] sm:$0xff]  ;;  %v488_v47 = vld [vmem:[#allocation2 + $0x690] sm:$0xff] }
  0x71   :  { %780 = vmatpush.msrb.mxu0 %v483_v57  ;;  %799 = vmatpush.msrb.mxu1 %v500_v48  ;;  %v162_v57 = vrot.slane %v149_v30, 4  ;;  %v164_v48 = vrot.slane %v125_v27, 4 }
  0x72   :  { %820 = vmatpush.msrb.mxu2 %v515_v49  ;;  %839 = vmatpush.msrb.mxu3 %v532_v50  ;;  %v503_v49 = vld [vmem:[#allocation2 + $0x708] sm:$0xff]  ;;  %v520_v50 = vld [vmem:[#allocation2 + $0x790] sm:$0xff] }
  0x73   :  { %781 = vmatpush.msrb.mxu0 %v482_v52  ;;  %800 = vmatpush.msrb.mxu1 %v499_v53  ;;  %v470_v52 = vld [vmem:[#allocation2 + $0x600] sm:$0xff]  ;;  %v487_v53 = vld [vmem:[#allocation2 + $0x688] sm:$0xff] }
  0x74   :  { %821 = vmatpush.msrb.mxu2 %v514_v46  ;;  %840 = vmatpush.msrb.mxu3 %v531_v55  ;;  %v274_v46 = vrot.slane %v261_v42, 4  ;;  %v276_v55 = vrot.slane %v237_v2, 4 }
  0x75   :  { %782 = vmatpush.msrb.mxu0 %v481_v58  ;;  %801 = vmatpush.msrb.mxu1 %v498_v59  ;;  %v502_v58 = vld [vmem:[#allocation2 + $0x700] sm:$0xff]  ;;  %v519_v59 = vld [vmem:[#allocation2 + $0x788] sm:$0xff] }
  0x76   :  { %822 = vmatpush.msrb.mxu2 %v513_v61  ;;  %841 = vmatpush.msrb.mxu3 %v530_v62  ;;  %v163_v61 = vsel %vm2644_vm0, %v162_v57, %v125_v27  ;;  %v165_v62 = vsel %vm2644_vm0, %v149_v30, %v164_v48 }
  0x77   :  { %783 = vmatpush.msrb.mxu0 %v480_v0  ;;  %802 = vmatpush.msrb.mxu1 %v497_v7  ;;  %v486_v0 = vld [vmem:[#allocation2 + $0x680] sm:$0xff] }
  0x78   :  { %823 = vmatpush.msrb.mxu2 %v512_v8  ;;  %842 = vmatpush.msrb.mxu3 %v529_v36  ;;  %v518_v7 = vld [vmem:[#allocation2 + $0x780] sm:$0xff]  ;;  %v275_v8 = vsel %vm2644_vm0, %v274_v46, %v237_v2  ;;  %v277_v36 = vsel %vm2644_vm0, %v261_v42, %v276_v55 }
  0x79   :  { %784 = vmatpush.msrb.mxu0 %v479_v54  ;;  %803 = vmatpush.msrb.mxu1 %v496_v9  ;;  %v1919_v54 = vld [vmem:[%s2638_s2] ss:$0 sm:$0xff]  ;;  %s2021_s2 = smov 80  }
  0x7a   :  { %824 = vmatpush.msrb.mxu2 %v511_v10  ;;  %843 = vmatpush.msrb.mxu3 %v528_v11 }
  0x7b   :  { %785 = vmatpush.msrb.mxu0 %v478_v12  ;;  %804 = vmatpush.msrb.mxu1 %v495_v13 }
  0x7c   :  { %825 = vmatpush.msrb.mxu2 %v510_v41  ;;  %844 = vmatpush.msrb.mxu3 %v527_v14 }
  0x7d   :  { %786 = vmatpush.msrb.mxu0 %v477_v17  ;;  %805 = vmatpush.msrb.mxu1 %v494_v18 }
  0x7e   :  { %826 = vmatpush.msrb.mxu2 %v509_v19  ;;  %845 = vmatpush.msrb.mxu3 %v526_v32 }
  0x7f   :  { %787 = vmatpush.msrb.mxu0 %v476_v4  ;;  %806 = vmatpush.msrb.mxu1 %v493_v16 }
  0x80   :  { %827 = vmatpush.msrb.mxu2 %v508_v22  ;;  %846 = vmatpush.msrb.mxu3 %v525_v23 }
  0x81   :  { %788 = vmatpush.msrb.mxu0 %v475_v24  ;;  %807 = vmatpush.msrb.mxu1 %v492_v43 }
  0x82   :  { %828 = vmatpush.msrb.mxu2 %v507_v31  ;;  %847 = vmatpush.msrb.mxu3 %v524_v45 }
  0x83   :  { %789 = vmatpush.msrb.mxu0 %v474_v60  ;;  %808 = vmatpush.msrb.mxu1 %v491_v51 }
  0x84   :  { %829 = vmatpush.msrb.mxu2 %v506_v5  ;;  %848 = vmatpush.msrb.mxu3 %v523_v33 }
  0x85   :  { %790 = vmatpush.msrb.mxu0 %v473_v21  ;;  %809 = vmatpush.msrb.mxu1 %v490_v26 }
  0x86   :  { %830 = vmatpush.msrb.mxu2 %v505_v63  ;;  %849 = vmatpush.msrb.mxu3 %v522_v34 }
  0x87   :  { %791 = vmatpush.msrb.mxu0 %v472_v6  ;;  %810 = vmatpush.msrb.mxu1 %v489_v35 }
  0x88   :  { %831 = vmatpush.msrb.mxu2 %v504_v39  ;;  %850 = vmatpush.msrb.mxu3 %v521_v44 }
  0x89   :  { %792 = vmatpush.msrb.mxu0 %v471_v28  ;;  %811 = vmatpush.msrb.mxu1 %v488_v47 }
  0x8a   :  { %832 = vmatpush.msrb.mxu2 %v503_v49  ;;  %851 = vmatpush.msrb.mxu3 %v520_v50 }
  0x8b   :  { %793 = vmatpush.msrb.mxu0 %v470_v52  ;;  %812 = vmatpush.msrb.mxu1 %v487_v53 }
  0x8c   :  { %833 = vmatpush.msrb.mxu2 %v502_v58  ;;  %852 = vmatpush.msrb.mxu3 %v519_v59 }
  0x8d   :  { %794 = vmatmul.f32.vlgmr.msrb.gmra.mxu0 %v163_v61  ;;  %834 = vmatmul.f32.vlgmr.msrb.gmra.mxu2 %v165_v62 }
  0x8e   :  { %813 = vmatpush.msrb.mxu1 %v486_v0  ;;  %853 = vmatpush.msrb.mxu3 %v518_v7 }
  0x8f   :  { %814 = vmatmul.f32.vlgmr.msrb.gmra.mxu1 %v275_v8  ;;  %854 = vmatmul.f32.vlgmr.msrb.gmra.mxu3 %v277_v36 }
  0xc4   :  { %v555_v9 = vpop.f32.mrf.mxu0 }
  0xc5   :  { %v556_v10 = vadd.f32 %v1919_v54, %v555_v9 }
  0xc7   :  { %v575_v11 = vpop.f32.mrf.mxu1 }
  0xc8   :  { %v576_v12 = vadd.f32 %v575_v11, %v556_v10 }
  0xca   :  { %v595_v13 = vpop.f32.mrf.mxu2 }
  0xcb   :  { %v596_v41 = vadd.f32 %v595_v13, %v576_v12 }
  0xcd   :  { %v615_v14 = vpop.f32.mrf.mxu3 }
  0xce   :  { %v616_v17 = vadd.f32 %v615_v14, %v596_v41 }
  0xd0   :  { %v635_v18 = vpop.f32.mrf.mxu0 }
  0xd1   :  { %v636_v19 = vadd.f32 %v635_v18, %v616_v17 }
  0xd3   :  { %v655_v32 = vpop.f32.mrf.mxu1 }
  0xd4   :  { %v656_v1 = vadd.f32 %v655_v32, %v636_v19  ;;  %v675_v20 = vpop.f32.mrf.mxu2 }
  0xd6   :  { %v676_v4 = vadd.f32 %v675_v20, %v656_v1 }
  0xd7   :  { %v695_v16 = vpop.f32.mrf.mxu3 }
  0xd8   :  { %v696_v23 = vadd.f32 %v695_v16, %v676_v4 }
  0xe8   :  { %v715_v22 = vpop.f32.mrf.mxu0 }
  0xe9   :  { %v716_v37 = vadd.f32 %v715_v22, %v696_v23 }
  0xeb   :  { %v735_v38 = vpop.f32.mrf.mxu1 }
  0xec   :  { %v736_v43 = vadd.f32 %v735_v38, %v716_v37 }
  0xee   :  { %v755_v24 = vpop.f32.mrf.mxu2 }
  0xef   :  { %v756_v31 = vadd.f32 %v755_v24, %v736_v43 }
  0xf1   :  { %v775_v45 = vpop.f32.mrf.mxu3 }
  0xf2   :  { %v776_v25 = vadd.f32 %v775_v45, %v756_v31 }
 0x10a   :  { %v795_v56 = vpop.f32.mrf.mxu0 }
 0x10b   :  { %v796_v60 = vadd.f32 %v795_v56, %v776_v25 }
 0x10c   :  { %v815_v51 = vpop.f32.mrf.mxu1 }
 0x10d   :  { %v816_v5 = vadd.f32 %v815_v51, %v796_v60 }
 0x110   :  { %v835_v33 = vpop.f32.mrf.mxu2 }
 0x111   :  { %v836_v29 = vadd.f32 %v835_v33, %v816_v5 }
 0x112   :  { %v855_v15 = vpop.f32.mrf.mxu3 }
 0x113   :  { %v856_v21 = vadd.f32 %v855_v15, %v836_v29 }
 0x115   :  { %v858_v26 = vmax.f32 %v856_v21, 0.0 }
 0x117   :  { %866 = vrot.lane.b32.xlu2 %v858_v26, %s2021_s2  ;;  %869 = vrot.lane.b32.xlu1 %v858_v26, %s2022_s7  ;;  %v883_v58 = vrot.slane %v858_v26, 4 }
 0x118   :  { %875 = vrot.lane.b32.xlu0 %v858_v26, %s2023_s8 }
 0x11f   :  { %872 = vrot.lane.b32.xlu2 %v858_v26, %s2024_s9  ;;  %878 = vrot.lane.b32.xlu1 %v858_v26, %s2025_s10 }
 0x120   :  { %863 = vrot.lane.b32.xlu0 %v858_v26, %s2026_s11 }
 0x128   :  { %860 = vrot.lane.b32.xlu0 %v858_v26, %s2027_s12 }
 0x171   :  { %v867_v27 = vpop.permute.xlu2 %866 }
 0x172   :  { %v893_v9 = vrot.slane %v867_v27, 4 }
 0x179   :  { %v873_v35 = vpop.permute.xlu2 %872 }
 0x17a   :  { %v919_v39 = vrot.slane %v873_v35, 4 }
 0x189   :  { %v870_v30 = vpop.permute.xlu1 %869 }
 0x18a   :  { %v876_v63 = vpop.permute.xlu0 %875  ;;  %v907_v34 = vrot.slane %v870_v30, 4 }
 0x18b   :  { %v905_v6 = vrot.slane %v876_v63, 4 }
 0x18c   :  { %v908_v42 = vsel %vm2644_vm0, %v876_v63, %v907_v34 }
 0x18d   :  { %v906_v2 = vsel %vm2644_vm0, %v905_v6, %v870_v30  ;;  %v916_v47 = vperm.slane %v908_v42, %v2093_v40 }
 0x18e   :  { %v912_v28 = vperm.slane %v906_v2, %v2093_v40 }
 0x18f   :  { %v967_v61 = vrot.slane %v916_v47, 4 }
 0x190   :  { %v955_v59 = vrot.slane %v912_v28, 4 }
 0x191   :  { %v879_v44 = vpop.permute.xlu1 %878 }
 0x192   :  { %v917_v57 = vrot.slane %v879_v44, 4  ;;  %v920_v48 = vsel %vm2644_vm0, %v879_v44, %v919_v39  ;;  %v864_v49 = vpop.permute.xlu0 %863 }
 0x193   :  { %v881_v50 = vrot.slane %v864_v49, 4  ;;  %v928_v53 = vperm.slane %v920_v48, %v2093_v40  ;;  %v884_v0 = vsel %vm2644_vm0, %v864_v49, %v883_v58 }
 0x194   :  { %v918_v52 = vsel %vm2644_vm0, %v917_v57, %v873_v35  ;;  %v892_v11 = vperm.slane %v884_v0, %v2093_v40 }
 0x195   :  { %v924_v46 = vperm.slane %v918_v52, %v2093_v40  ;;  %v882_v55 = vsel %vm2644_vm0, %v881_v50, %v858_v26  ;;  %v965_v8 = vrot.slane %v928_v53, 4  ;;  %v968_v36 = vsel %vm2644_vm0, %v928_v53, %v967_v61 }
 0x196   :  { %v888_v54 = vperm.slane %v882_v55, %v2093_v40  ;;  %v976_v13 = vperm.slane %v968_v36, %v2149_v3  ;;  %v943_v4 = vrot.slane %v892_v11, 4 }
 0x197   :  { %v953_v62 = vrot.slane %v924_v46, 4  ;;  %v956_v7 = vsel %vm2644_vm0, %v924_v46, %v955_v59  ;;  %v966_v18 = vsel %vm2644_vm0, %v965_v8, %v916_v47 }
 0x198   :  { %v964_v17 = vperm.slane %v956_v7, %v2149_v3  ;;  %v931_v19 = vrot.slane %v888_v54, 4  ;;  %v972_v37 = vperm.slane %v966_v18, %v2149_v3  ;;  %v989_v43 = vrot.slane %v976_v13, 4 }
 0x199   :  { %v954_v10 = vsel %vm2644_vm0, %v953_v62, %v912_v28 }
 0x19a   :  { %v861_v12 = vpop.permute.xlu0 %860  ;;  %v960_v1 = vperm.slane %v954_v10, %v2149_v3  ;;  %v981_v24 = vrot.slane %v964_v17, 4  ;;  %v985_v63 = vrot.slane %v972_v37, 4 }
 0x19b   :  { %v894_v41 = vsel %vm2644_vm0, %v893_v9, %v861_v12  ;;  %v895_v14 = vrot.slane %v861_v12, 4 }
 0x19c   :  { %v900_v32 = vperm.slane %v894_v41, %v2093_v40  ;;  %v977_v25 = vrot.slane %v960_v1, 4 }
 0x19d   :  { %v896_v20 = vsel %vm2644_vm0, %v867_v27, %v895_v14  ;;  %v1323_v14 = vlaneseq }
 0x19e   :  { %v904_v16 = vperm.slane %v896_v20, %v2093_v40  ;;  %v929_v22 = vrot.slane %v900_v32, 4  ;;  %v932_v23 = vsel %vm2644_vm0, %v900_v32, %v931_v19 }
 0x19f   :  { %v940_v38 = vperm.slane %v932_v23, %v2149_v3 }
 0x1a0   :  { %v930_v31 = vsel %vm2644_vm0, %v929_v22, %v888_v54  ;;  %v941_v45 = vrot.slane %v904_v16, 4  ;;  %v944_v56 = vsel %vm2644_vm0, %v904_v16, %v943_v4 }
 0x1a1   :  { %v982_v60 = vsel %vm2644_vm0, %v981_v24, %v940_v38  ;;  %v936_v51 = vperm.slane %v930_v31, %v2149_v3  ;;  %v983_v5 = vrot.slane %v940_v38, 4  ;;  %v952_v33 = vperm.slane %v944_v56, %v2149_v3 }
 0x1a2   :  { %1882 = vmatpush.xpose.msk.msra.mxu2 %vm2642_vm1, %v982_v60  ;;  %v942_v29 = vsel %vm2644_vm0, %v941_v45, %v892_v11 }
 0x1a3   :  { %v978_v15 = vsel %vm2644_vm0, %v977_v25, %v936_v51  ;;  %v984_v21 = vsel %vm2644_vm0, %v964_v17, %v983_v5  ;;  %v990_v26 = vsel %vm2644_vm0, %v989_v43, %v952_v33  ;;  %v979_v27 = vrot.slane %v936_v51, 4 }
 0x1a4   :  { %1878 = vmatpush.xpose.msk.msra.mxu0 %vm2642_vm1, %v978_v15  ;;  %1884 = vmatpush.xpose.msk.msra.mxu3 %vm2642_vm1, %v984_v21  ;;  %v948_v30 = vperm.slane %v942_v29, %v2149_v3  ;;  %v991_v34 = vrot.slane %v952_v33, 4  ;;  %v1324_v17 = vand.u32 127, %v1323_v14 }
 0x1a5   :  { %v980_v6 = vsel %vm2644_vm0, %v960_v1, %v979_v27  ;;  %1883 = vmatmul.msk.f32.vlgmr.msra.gmra.mxu2 %vm2642_vm1, %v982_v60 }
 0x1a6   :  { %1890 = vmatpush.xpose.msk.msrb.mxu2 %vm2642_vm1, %v990_v26  ;;  %1880 = vmatpush.xpose.msk.msra.mxu1 %vm2642_vm1, %v980_v6  ;;  %v986_v35 = vsel %vm2644_vm0, %v985_v63, %v948_v30  ;;  %v992_v2 = vsel %vm2644_vm0, %v976_v13, %v991_v34  ;;  %v987_v42 = vrot.slane %v948_v30, 4 }
 0x1a7   :  { %1879 = vmatmul.msk.f32.vlgmr.msra.gmra.mxu0 %vm2642_vm1, %v978_v15  ;;  %1885 = vmatmul.msk.f32.vlgmr.msra.gmra.mxu3 %vm2642_vm1, %v984_v21 }
 0x1a8   :  { %1886 = vmatpush.xpose.msk.msrb.mxu0 %vm2642_vm1, %v986_v35  ;;  %1892 = vmatpush.xpose.msk.msrb.mxu3 %vm2642_vm1, %v992_v2  ;;  %v988_v39 = vsel %vm2644_vm0, %v972_v37, %v987_v42 }
 0x1a9   :  { %1881 = vmatmul.msk.f32.vlgmr.msra.gmra.mxu1 %vm2642_vm1, %v980_v6 }
 0x1aa   :  { %1888 = vmatpush.xpose.msk.msrb.mxu1 %vm2642_vm1, %v988_v39 }
 0x1ad   :  { %1891 = vmatmul.msk.f32.vlgmr.msrb.gmra.mxu2 %vm2642_vm1, %v990_v26 }
 0x1af   :  { %1887 = vmatmul.msk.f32.vlgmr.msrb.gmra.mxu0 %vm2642_vm1, %v986_v35  ;;  %1893 = vmatmul.msk.f32.vlgmr.msrb.gmra.mxu3 %vm2642_vm1, %v992_v2 }
 0x1b1   :  { %1889 = vmatmul.msk.f32.vlgmr.msrb.gmra.mxu1 %vm2642_vm1, %v988_v39 }
 0x224   :  { %v1014_v44 = vpop.f32.mrf.mxu0 }
 0x225   :  { %v2391_v28 = vmul.f32 0.0625, %v1014_v44 }
 0x226   :  { %v1037_v47 = vpop.f32.mrf.mxu1 }
 0x227   :  { %v2393_v57 = vmul.f32 0.0625, %v1037_v47  ;;  %v1291_v48 = vsel %vm2643_vm2, %v2391_v28, 0.0  ;;  %v2407_v15 = vadd.f32 1e-10, %v2391_v28 }
 0x228   :  { %v1060_v49 = vpop.f32.mrf.mxu2  ;;  %1292 = vadd.xlane.f32.xlu1 %v1291_v48 }
 0x229   :  { %v1180_v50 = vmul.f32 0.0625, %v1060_v49  ;;  %v1294_v52 = vsel %vm2643_vm2, %v2393_v57, 0.0  ;;  %v2410_v21 = vadd.f32 1e-10, %v2393_v57  ;;  %1922 = vrsqrt.f32 %v2407_v15 }
 0x22a   :  { %v1083_v53 = vpop.f32.mrf.mxu3  ;;  %1295 = vadd.xlane.f32.xlu2 %v1294_v52  ;;  %vm1201_vm10 = vcmp.eq.f32.partialorder %v2407_v15, inf  ;;  %vm1203_vm14 = vcmp.eq.f32.partialorder %v2407_v15, 0.0 }
 0x22b   :  { %v1297_v46 = vsel %vm2643_vm2, %v1180_v50, 0.0  ;;  %v1181_v58 = vmul.f32 0.0625, %v1083_v53  ;;  %v2412_v26 = vadd.f32 1e-10, %v1180_v50  ;;  %1924 = vrsqrt.f32 %v2410_v21 }
 0x22c   :  { %1298 = vadd.xlane.f32.xlu0 %v1297_v46  ;;  %v1106_v55 = vpop.f32.mrf.mxu0  ;;  %vm1213_vm11 = vcmp.eq.f32.partialorder %v2410_v21, inf  ;;  %vm1215_vm15 = vcmp.eq.f32.partialorder %v2410_v21, 0.0 }
 0x22d   :  { %v1182_v59 = vmul.f32 0.0625, %v1106_v55  ;;  %v1300_v7 = vsel %vm2643_vm2, %v1181_v58, 0.0  ;;  %v2414_v27 = vadd.f32 1e-10, %v1181_v58  ;;  %1926 = vrsqrt.f32 %v2412_v26 }
 0x22e   :  { %v1129_v8 = vpop.f32.mrf.mxu1  ;;  %vm1225_vm12 = vcmp.eq.f32.partialorder %v2412_v26, inf }
 0x22f   :  { %v1303_v62 = vsel %vm2643_vm2, %v1182_v59, 0.0  ;;  %v1183_v10 = vmul.f32 0.0625, %v1129_v8  ;;  %v2417_v30 = vadd.f32 1e-10, %v1182_v59  ;;  %1928 = vrsqrt.f32 %v2414_v27  ;;  %v1923_v35 = vpop.eup %1922 }
 0x230   :  { %v1152_v61 = vpop.f32.mrf.mxu2  ;;  %1304 = vadd.xlane.f32.xlu1 %v1303_v62  ;;  %v1195_v48 = vmul.f32 %v1923_v35, %v2407_v15  ;;  %vm1237_vm13 = vcmp.eq.f32.partialorder %v2414_v27, inf }
 0x231   :  { %v1184_v0 = vmul.f32 0.0625, %v1152_v61  ;;  %v1306_v12 = vsel %vm2643_vm2, %v1183_v10, 0.0  ;;  %v2420_v63 = vadd.f32 1e-10, %v1183_v10  ;;  %1930 = vrsqrt.f32 %v2417_v30  ;;  %v1925_v2 = vpop.eup %1924 }
 0x232   :  { %1301 = vadd.xlane.f32.xlu2 %v1300_v7  ;;  %v1175_v36 = vpop.f32.mrf.mxu3  ;;  %v1207_v49 = vmul.f32 %v1925_v2, %v2410_v21  ;;  %v1196_v59 = vmul.f32 %v1923_v35, %v1195_v48 }
 0x233   :  { %v1309_v54 = vsel %vm2643_vm2, %v1184_v0, 0.0  ;;  %v1185_v9 = vmul.f32 0.0625, %v1175_v36  ;;  %v2423_v34 = vadd.f32 1e-10, %v1184_v0  ;;  %1932 = vrsqrt.f32 %v2420_v63  ;;  %v1927_v42 = vpop.eup %1926 }
 0x234   :  { %1310 = vadd.xlane.f32.xlu0 %v1309_v54  ;;  %v1219_v50 = vmul.f32 %v1927_v42, %v2412_v26  ;;  %v1208_v61 = vmul.f32 %v1925_v2, %v1207_v49 }
 0x235   :  { %v1312_v11 = vsel %vm2643_vm2, %v1185_v9, 0.0  ;;  %v2426_v6 = vadd.f32 1e-10, %v1185_v9  ;;  %1934 = vrsqrt.f32 %v2423_v34  ;;  %v1929_v39 = vpop.eup %1928  ;;  %v1197_v9 = vmul.f32 0.5, %v1196_v59 }
 0x236   :  { %v1231_v52 = vmul.f32 %v1929_v39, %v2414_v27  ;;  %v1220_v62 = vmul.f32 %v1927_v42, %v1219_v50  ;;  %v1209_v10 = vmul.f32 0.5, %v1208_v61  ;;  %vm1275_vm1 = vcmp.eq.f32.partialorder %v2423_v34, 0.0 }
 0x237   :  { %1936 = vrsqrt.f32 %v2426_v6  ;;  %v1931_v44 = vpop.eup %1930 }
 0x238   :  { %1313 = vadd.xlane.f32.xlu1 %v1312_v11  ;;  %v1243_v53 = vmul.f32 %v1931_v44, %v2417_v30  ;;  %v1232_v0 = vmul.f32 %v1929_v39, %v1231_v52  ;;  %v1221_v11 = vmul.f32 0.5, %v1220_v62  ;;  %v1264_v52 = vand.u32 2147483648, %v2420_v63 }
 0x239   :  { %v1933_v28 = vpop.eup %1932 }
 0x23a   :  { %1307 = vadd.xlane.f32.xlu2 %v1306_v12  ;;  %v1255_v46 = vmul.f32 %v1933_v28, %v2420_v63  ;;  %v1244_v7 = vmul.f32 %v1931_v44, %v1243_v53  ;;  %v1233_v12 = vmul.f32 0.5, %v1232_v0 }
 0x23b   :  { %v1935_v47 = vpop.eup %1934 }
 0x23c   :  { %v1267_v55 = vmul.f32 %v1935_v47, %v2423_v34  ;;  %v1256_v8 = vmul.f32 %v1933_v28, %v1255_v46 }
 0x23d   :  { %v1937_v57 = vpop.eup %1936 }
 0x23e   :  { %v1279_v58 = vmul.f32 %v1937_v57, %v2426_v6  ;;  %v1268_v36 = vmul.f32 %v1935_v47, %v1267_v55  ;;  %v1276_v55 = vand.u32 2147483648, %v2423_v34 }
 0x240   :  { %v1280_v54 = vmul.f32 %v1937_v57, %v1279_v58  ;;  %v1269_v14 = vmul.f32 0.5, %v1268_v36 }
 0x29b   :  { %v1293_v13 = vpop.xlane.xlu1 %1292 }
 0x29c   :  { %v1325_v20 = vperm.slane %v1293_v13, %v1324_v17  ;;  %v1245_v13 = vmul.f32 0.5, %v1244_v7 }
 0x29d   :  { %v1296_v41 = vpop.xlane.xlu2 %1295 }
 0x29e   :  { %v1326_v19 = vperm.slane %v1296_v41, %v1324_v17 }
 0x29f   :  { %v1299_v18 = vpop.xlane.xlu0 %1298 }
 0x2a0   :  { %v1327_v4 = vperm.slane %v1299_v18, %v1324_v17  ;;  %v1334_v16 = vsel %vm1333_vm3, %v1326_v19, %v1325_v20  ;;  %v1257_v19 = vmul.f32 0.5, %v1256_v8  ;;  %v1222_v20 = vsub.f32 1.5, %v1221_v11 }
 0x2a1   :  { %vm1227_vm3 = vcmp.eq.f32.partialorder %v2412_v26, 0.0  ;;  %v1288_v11 = vand.u32 2147483648, %v2426_v6 }
 0x2a2   :  { %v1336_v23 = vsel %vm1335_vm4, %v1327_v4, %v1334_v16  ;;  %v1234_v4 = vsub.f32 1.5, %v1233_v12  ;;  %v1246_v16 = vsub.f32 1.5, %v1245_v13  ;;  %vm1239_vm4 = vcmp.eq.f32.partialorder %v2414_v27, 0.0 }
 0x2a3   :  { %v1305_v32 = vpop.xlane.xlu1 %1304 }
 0x2a4   :  { %v1329_v24 = vperm.slane %v1305_v32, %v1324_v17  ;;  %v1198_v32 = vsub.f32 1.5, %v1197_v9 }
 0x2a5   :  { %v1302_v1 = vpop.xlane.xlu2 %1301 }
 0x2a6   :  { %v1328_v22 = vperm.slane %v1302_v1, %v1324_v17  ;;  %v1210_v1 = vsub.f32 1.5, %v1209_v10 }
 0x2a7   :  { %v1311_v38 = vpop.xlane.xlu0 %1310 }
 0x2a8   :  { %v1338_v37 = vsel %vm1337_vm5, %v1328_v22, %v1336_v23  ;;  %v1331_v25 = vperm.slane %v1311_v38, %v1324_v17  ;;  %v1270_v22 = vsub.f32 1.5, %v1269_v14  ;;  %v1204_v38 = vand.u32 2147483648, %v2407_v15 }
 0x2a9   :  { %v1340_v56 = vsel %vm1339_vm6, %v1329_v24, %v1338_v37  ;;  %v1258_v37 = vsub.f32 1.5, %v1257_v19  ;;  %v1216_v24 = vand.u32 2147483648, %v2410_v21  ;;  %vm1249_vm5 = vcmp.eq.f32.partialorder %v2417_v30, inf }
 0x2aa   :  { %vm1251_vm6 = vcmp.eq.f32.partialorder %v2417_v30, 0.0 }
 0x2ab   :  { %v1314_v43 = vpop.xlane.xlu1 %1313 }
 0x2ac   :  { %v1332_v60 = vperm.slane %v1314_v43, %v1324_v17  ;;  %v1199_v43 = vmul.f32 %v1923_v35, %v1198_v32 }
 0x2ad   :  { %v1308_v31 = vpop.xlane.xlu2 %1307 }
 0x2ae   :  { %v1330_v45 = vperm.slane %v1308_v31, %v1324_v17  ;;  %v1281_v17 = vmul.f32 0.5, %v1280_v54  ;;  %v1223_v31 = vmul.f32 %v1927_v42, %v1222_v20  ;;  %v1200_v42 = vmul.f32 %v1199_v43, %v2407_v15 }
 0x2b0   :  { %v1342_v51 = vsel %vm1341_vm7, %v1330_v45, %v1340_v56  ;;  %v1282_v23 = vsub.f32 1.5, %v1281_v17  ;;  %v1211_v45 = vmul.f32 %v1925_v2, %v1210_v1  ;;  %v1235_v56 = vmul.f32 %v1929_v39, %v1234_v4 }
 0x2b1   :  { %v1344_v5 = vsel %vm1343_vm8, %v1331_v25, %v1342_v51  ;;  %v1228_v25 = vand.u32 2147483648, %v2412_v26  ;;  %v1252_v2 = vand.u32 2147483648, %v2417_v30  ;;  %v1224_v39 = vmul.f32 %v1223_v31, %v2412_v26 }
 0x2b2   :  { %v1346_v33 = vsel %vm1345_vm9, %v1332_v60, %v1344_v5  ;;  %v1247_v60 = vmul.f32 %v1931_v44, %v1246_v16  ;;  %v1271_v5 = vmul.f32 %v1935_v47, %v1270_v22  ;;  %v1283_v48 = vmul.f32 %v1937_v57, %v1282_v23 }
 0x2b3   :  { %v1348_v29 = vsel %vm2643_vm2, %v1346_v33, 0.0  ;;  %v1240_v33 = vand.u32 2147483648, %v2414_v27  ;;  %v1212_v44 = vmul.f32 %v1211_v45, %v2410_v21  ;;  %vm1261_vm7 = vcmp.eq.f32.partialorder %v2420_v63, inf }
 0x2b4   :  { %1349 = vadd.xlane.f32.xlu2 %v1348_v29  ;;  %v1259_v29 = vmul.f32 %v1933_v28, %v1258_v37  ;;  %v1236_v28 = vmul.f32 %v1235_v56, %v2414_v27  ;;  %v1248_v57 = vmul.f32 %v1247_v60, %v2417_v30  ;;  %vm1263_vm8 = vcmp.eq.f32.partialorder %v2420_v63, 0.0 }
 0x2b5   :  { %v1272_v49 = vmul.f32 %v1271_v5, %v2423_v34  ;;  %v1284_v53 = vmul.f32 %v1283_v48, %v2426_v6  ;;  %vm1273_vm9 = vcmp.eq.f32.partialorder %v2423_v34, inf  ;;  %v1202_v58 = vsel %vm1201_vm10, %v2407_v15, %v1200_v42 }
 0x2b6   :  { %v1260_v50 = vmul.f32 %v1259_v29, %v2420_v63  ;;  %v1214_v59 = vsel %vm1213_vm11, %v2410_v21, %v1212_v44  ;;  %v1226_v61 = vsel %vm1225_vm12, %v2412_v26, %v1224_v39  ;;  %vm1285_vm2 = vcmp.eq.f32.partialorder %v2426_v6, inf }
 0x2b7   :  { %v1238_v0 = vsel %vm1237_vm13, %v2414_v27, %v1236_v28  ;;  %v1250_v7 = vsel %vm1249_vm5, %v2417_v30, %v1248_v57  ;;  %v1274_v36 = vsel %vm1273_vm9, %v2423_v34, %v1272_v49  ;;  %v1286_v54 = vsel %vm1285_vm2, %v2426_v6, %v1284_v53  ;;  %v1548_v30 = vld [vmem:[%s2639_s3 + $0x48] sm:$0xff] }
 0x2b8   :  { %v1262_v8 = vsel %vm1261_vm7, %v2420_v63, %v1260_v50  ;;  %vm1287_vm10 = vcmp.eq.f32.partialorder %v2426_v6, 0.0  ;;  %v1205_v10 = vsel %vm1203_vm14, %v1204_v38, %v1202_v58  ;;  %v1217_v12 = vsel %vm1215_vm15, %v1216_v24, %v1214_v59  ;;  %v1547_v63 = vld [vmem:[%s2639_s3 + $0x40] sm:$0xff]  ;;  %1594 = vmatpush.msra.mxu1 %v1548_v30  ;;  %1659 = vmatpush.msra.mxu2 %v1548_v30 }
 0x2b9   :  { %v1229_v13 = vsel %vm1227_vm3, %v1228_v25, %v1226_v61  ;;  %v1253_v14 = vsel %vm1251_vm6, %v1252_v2, %v1250_v7  ;;  %v1265_v15 = vsel %vm1263_vm8, %v1264_v52, %v1262_v8  ;;  %v1277_v6 = vsel %vm1275_vm1, %v1276_v55, %v1274_v36  ;;  %1730 = vmatpush.msra.mxu3 %v1548_v30 }
 0x2ba   :  { %1595 = vmatpush.msra.mxu1 %v1547_v63  ;;  %1660 = vmatpush.msra.mxu2 %v1547_v63 }
 0x2bb   :  { %1731 = vmatpush.msra.mxu3 %v1547_v63 }
 0x2bc   :  { %1801 = vmatpush.msrb.mxu1 %v1548_v30 }
 0x2be   :  { %1802 = vmatpush.msrb.mxu1 %v1547_v63 }
 0x327   :  { %v1350_v41 = vpop.xlane.xlu2 %1349 }
 0x328   :  { %v2440_v18 = vadd.f32 6.4e-09, %v1350_v41  ;;  %v1241_v41 = vsel %vm1239_vm4, %v1240_v33, %v1238_v0 }
 0x32a   :  { %1938 = vrsqrt.f32 %v2440_v18  ;;  %vm1358_vm11 = vweird.f32 %v2440_v18 }
 0x330   :  { %v1939_v51 = vpop.eup %1938 }
 0x331   :  { %v1353_v35 = vmul.f32 %v1939_v51, %v2440_v18  ;;  %vm1359_vm0 = vweird.f32 %v1939_v51  ;;  %v1289_v18 = vsel %vm1287_vm10, %v1288_v11, %v1286_v54 }
 0x332   :  { %vm1360_vm12 = vmor %vm1358_vm11, %vm1359_vm0  ;;  %vm2645_vm0 = vcmask 1047556  }
 0x333   :  { %v1354_v47 = vmul.f32 %v1939_v51, %v1353_v35  ;;  %vm2646_vm1 = vmmov %vm2645_vm0 }
 0x334   :  { %vm2647_vm2 = vmmov %vm2645_vm0 }
 0x335   :  { %v1355_v46 = vmul.f32 0.5, %v1354_v47  ;;  %vm2648_vm13 = vmmov %vm2645_vm0 }
 0x336   :  { %vm2649_vm14 = vmmov %vm2645_vm0 }
 0x337   :  { %v1356_v62 = vsub.f32 1.5, %v1355_v46  ;;  %vm2650_vm15 = vmmov %vm2645_vm0 }
 0x338   :  { %vm2651_vm3 = vmmov %vm2645_vm0 }
 0x339   :  { %v1357_v9 = vmul.f32 %v1939_v51, %v1356_v62  ;;  %vm2652_vm4 = vmmov %vm2645_vm0 }
 0x33a   :  { %vm2653_vm5 = vmmov %vm2645_vm0 }
 0x33b   :  { %v1361_v17 = vsel %vm1360_vm12, %v1939_v51, %v1357_v9  ;;  %vm2654_vm6 = vmmov %vm2645_vm0 }
 0x33c   :  { %v1365_v19 = vperm.slane %v1361_v17, 2  ;;  %v1363_v21 = vperm.slane %v1361_v17, 0  ;;  %v1364_v32 = vperm.slane %v1361_v17, 1  ;;  %v1366_v1 = vperm.slane %v1361_v17, 3  ;;  %vm2655_vm7 = vmmov %vm2645_vm0 }
 0x33d   :  { %v1367_v26 = vperm.slane %v1361_v17, 4  ;;  %v1368_v20 = vperm.slane %v1361_v17, 5  ;;  %v1369_v4 = vperm.slane %v1361_v17, 6  ;;  %v1370_v27 = vperm.slane %v1361_v17, 7  ;;  %vm2656_vm8 = vmmov %vm2645_vm0 }
 0x33e   :  { %v1379_v16 = vmul.f32 %v1363_v21, %v1205_v10  ;;  %v1380_v34 = vmul.f32 %v1364_v32, %v1217_v12  ;;  %v1381_v22 = vmul.f32 %v1365_v19, %v1229_v13  ;;  %v1382_v23 = vmul.f32 %v1366_v1, %v1241_v41  ;;  %vm2657_vm9 = vmmov %vm2645_vm0 }
 0x33f   :  { %v1383_v37 = vmul.f32 %v1367_v26, %v1253_v14  ;;  %v1384_v38 = vmul.f32 %v1368_v20, %v1265_v15  ;;  %v1385_v24 = vmul.f32 %v1369_v4, %v1277_v6  ;;  %v1386_v43 = vmul.f32 %v1370_v27, %v1289_v18  ;;  %vm2658_vm10 = vmmov %vm2645_vm0 }
 0x340   :  { %v1387_v31 = vrot.slane %v1381_v22, 4  ;;  %v1399_v45 = vrot.slane %v1382_v23, 4  ;;  %v1389_v25 = vrot.slane %v1379_v16, 4  ;;  %v1401_v56 = vrot.slane %v1380_v34, 4  ;;  %vm2659_vm11 = vmmov %vm2645_vm0 }
 0x341   :  { %v1411_v60 = vrot.slane %v1385_v24, 4  ;;  %v1423_v51 = vrot.slane %v1386_v43, 4  ;;  %v1413_v5 = vrot.slane %v1383_v37, 4  ;;  %v1425_v33 = vrot.slane %v1384_v38, 4  ;;  %vm2660_vm12 = vmmov %vm2645_vm0 }
 0x342   :  { %v1388_v29 = vsel %vm2645_vm0, %v1387_v31, %v1379_v16  ;;  %v1400_v48 = vsel %vm2646_vm1, %v1399_v45, %v1380_v34  ;;  %v1390_v35 = vsel %vm2647_vm2, %v1381_v22, %v1389_v25  ;;  %v1402_v2 = vsel %vm2648_vm13, %v1382_v23, %v1401_v56  ;;  %vm2661_vm1 = vmmov %vm2645_vm0  ;;  %v1546_v25 = vld [vmem:[%s2639_s3 + $0x38] sm:$0xff]  ;;  %v1544_v56 = vld [vmem:[%s2639_s3 + $0x28] sm:$0xff] }
 0x343   :  { %v1394_v42 = vperm.slane %v1388_v29, %v2093_v40  ;;  %v1406_v39 = vperm.slane %v1400_v48, %v2093_v40  ;;  %v1412_v44 = vsel %vm2649_vm14, %v1411_v60, %v1383_v37  ;;  %v1424_v28 = vsel %vm2650_vm15, %v1423_v51, %v1384_v38  ;;  %vm2662_vm2 = vmmov %vm2645_vm0  ;;  %1564 = vmatpush.msra.mxu0 %v1546_v25  ;;  %v1543_v60 = vld [vmem:[%s2639_s3 + $0x20] sm:$0xff]  ;;  %v1542_v51 = vld [vmem:[%s2639_s3 + $0x18] sm:$0xff] }
 0x344   :  { %v1418_v47 = vperm.slane %v1412_v44, %v2093_v40  ;;  %v1430_v57 = vperm.slane %v1424_v28, %v2093_v40  ;;  %v1398_v49 = vperm.slane %v1390_v35, %v2093_v40  ;;  %v1410_v50 = vperm.slane %v1402_v2, %v2093_v40  ;;  %vm2663_vm13 = vmmov %vm2645_vm0  ;;  %v1539_v29 = vld [vmem:[%s2639_s3] sm:$0xff] }
 0x345   :  { %v1437_v52 = vrot.slane %v1394_v42, 4  ;;  %v1435_v53 = vrot.slane %v1406_v39, 4  ;;  %v1414_v46 = vsel %vm2651_vm3, %v1385_v24, %v1413_v5  ;;  %v1426_v55 = vsel %vm2652_vm4, %v1386_v43, %v1425_v33  ;;  %vm2664_vm14 = vmmov %vm2645_vm0  ;;  %v1541_v5 = vld [vmem:[%s2639_s3 + $0x10] sm:$0xff]  ;;  %v1540_v33 = vld [vmem:[%s2639_s3 + $0x8] sm:$0xff] }
 0x346   :  { %v1461_v58 = vrot.slane %v1418_v47, 4  ;;  %v1459_v59 = vrot.slane %v1430_v57, 4  ;;  %v1422_v61 = vperm.slane %v1414_v46, %v2093_v40  ;;  %v1434_v62 = vperm.slane %v1426_v55, %v2093_v40  ;;  %vm2665_vm15 = vmmov %vm2645_vm0  ;;  %v2590_v28 = vld [vmem:[%s2640_s4 + $0x1] ss:$0 sm:$0xff] }
 0x347   :  { %v1438_v0 = vsel %vm2653_vm5, %v1406_v39, %v1437_v52  ;;  %v1436_v7 = vsel %vm2654_vm6, %v1435_v53, %v1394_v42  ;;  %v1449_v8 = vrot.slane %v1398_v49, 4  ;;  %v1447_v36 = vrot.slane %v1410_v50, 4  ;;  %vm2666_vm3 = vmmov %vm2645_vm0 }
 0x348   :  { %v1446_v54 = vperm.slane %v1438_v0, %v2149_v3  ;;  %v1462_v9 = vsel %vm2655_vm7, %v1430_v57, %v1461_v58  ;;  %v1442_v10 = vperm.slane %v1436_v7, %v2149_v3  ;;  %v1460_v11 = vsel %vm2656_vm8, %v1459_v59, %v1418_v47  ;;  %vm2667_vm4 = vmmov %vm2645_vm0 }
 0x349   :  { %v1470_v12 = vperm.slane %v1462_v9, %v2149_v3  ;;  %v1466_v13 = vperm.slane %v1460_v11, %v2149_v3  ;;  %v1450_v40 = vsel %vm2657_vm9, %v1410_v50, %v1449_v8  ;;  %v1473_v41 = vrot.slane %v1422_v61, 4 }
 0x34a   :  { %v1489_v14 = vrot.slane %v1446_v54, 4  ;;  %v1485_v17 = vrot.slane %v1442_v10, 4  ;;  %v1458_v15 = vperm.slane %v1450_v40, %v2149_v3  ;;  %v1448_v6 = vsel %vm2658_vm10, %v1447_v36, %v1398_v49 }
 0x34b   :  { %v1487_v18 = vrot.slane %v1470_v12, 4  ;;  %v1483_v19 = vrot.slane %v1466_v13, 4  ;;  %v1474_v21 = vsel %vm2659_vm11, %v1434_v62, %v1473_v41  ;;  %v1454_v32 = vperm.slane %v1448_v6, %v2149_v3 }
 0x34c   :  { %v1490_v1 = vsel %vm2660_vm12, %v1470_v12, %v1489_v14  ;;  %v1486_v26 = vsel %vm2645_vm0, %v1466_v13, %v1485_v17  ;;  %v1482_v20 = vperm.slane %v1474_v21, %v2149_v3  ;;  %v1497_v4 = vrot.slane %v1458_v15, 4 }
 0x34d   :  { %1508 = vrot.lane.b32.xlu2 %v1490_v1, %s2028_s17  ;;  %v1488_v27 = vsel %vm2661_vm1, %v1487_v18, %v1446_v54  ;;  %1500 = vrot.lane.b32.xlu0 %v1486_v26, %s2018_s24  ;;  %v1471_v30 = vrot.slane %v1434_v62, 4  ;;  %v1493_v16 = vrot.slane %v1454_v32, 4  ;;  %v2029_v22 = vmov 0.0   ;;  %s2030_s24 = smov 56  }
 0x34e   :  { %1504 = vrot.lane.b32.xlu1 %v1488_v27, %s2025_s10  ;;  %v1498_v63 = vsel %vm2662_vm2, %v1482_v20, %v1497_v4  ;;  %v1495_v34 = vrot.slane %v1482_v20, 4  ;;  %1596 = vmatmul.f32.vlgmr.msra.gmra.mxu1 %v2029_v22  ;;  %v1484_v23 = vsel %vm2663_vm13, %v1483_v19, %v1442_v10  ;;  %vm2668_vm5 = vcmask 64512  }
 0x34f   :  { %v1472_v37 = vsel %vm2664_vm14, %v1471_v30, %v1422_v61  ;;  %vm2669_vm6 = vcmask 130048   ;;  %vm1529_vm7 = vcmask 195584   ;;  %vm1531_vm8 = vcmask 261120   ;;  %v1921_v61 = vld [vmem:[%s2640_s4] ss:$0 sm:$0xff]  ;;  %s2032_s4 = smov [#allocation5]  }
 0x350   :  { %v1478_v38 = vperm.slane %v1472_v37, %v2149_v3  ;;  %v1496_v24 = vsel %vm2665_vm15, %v1495_v34, %v1458_v15  ;;  %v1545_v3 = vld [vmem:[%s2639_s3 + $0x30] sm:$0xff]  ;;  %vm1533_vm9 = vcmask 326656   ;;  %vm1535_vm10 = vcmask 392192   ;;  %vm2670_vm14 = vmmov %vm2669_vm6 }
 0x351   :  { %1565 = vmatpush.msra.mxu0 %v1545_v3  ;;  %vm1537_vm11 = vcmask 457728   ;;  %vm1552_vm12 = vcmask 523264  }
 0x352   :  { %v1494_v43 = vsel %vm2666_vm3, %v1478_v38, %v1493_v16  ;;  %v1491_v31 = vrot.slane %v1478_v38, 4 }
 0x353   :  { %1566 = vmatpush.msra.mxu0 %v1544_v56 }
 0x354   :  { %v1492_v45 = vsel %vm2667_vm4, %v1491_v31, %v1454_v32 }
 0x355   :  { %1524 = vrot.lane.b32.xlu2 %v1498_v63, %s2030_s24  ;;  %1512 = vrot.lane.b32.xlu0 %v1492_v45, %s2023_s8 }
 0x356   :  { %1516 = vrot.lane.b32.xlu1 %v1494_v43, %s2031_s18  ;;  %1567 = vmatpush.msra.mxu0 %v1543_v60 }
 0x358   :  { %1568 = vmatpush.msra.mxu0 %v1542_v51 }
 0x35a   :  { %1569 = vmatpush.msra.mxu0 %v1541_v5 }
 0x35c   :  { %1570 = vmatpush.msra.mxu0 %v1540_v33 }
 0x35d   :  { %1520 = vrot.lane.b32.xlu0 %v1496_v24, %s2024_s9 }
 0x35e   :  { %1571 = vmatpush.msra.mxu0 %v1539_v29 }
 0x3a7   :  { %v1509_v42 = vpop.permute.xlu2 %1508 }
 0x3af   :  { %v1525_v55 = vpop.permute.xlu2 %1524 }
 0x3bf   :  { %v1501_v48 = vpop.permute.xlu0 %1500 }
 0x3c0   :  { %v1505_v35 = vpop.permute.xlu1 %1504  ;;  %v1527_v2 = vsel %vm2668_vm5, %v1484_v23, %v1501_v48 }
 0x3c1   :  { %v1528_v44 = vsel %vm2669_vm6, %v1527_v2, %v1505_v35 }
 0x3c2   :  { %v1530_v47 = vsel %vm1529_vm7, %v1528_v44, %v1509_v42 }
 0x3c7   :  { %v1513_v39 = vpop.permute.xlu0 %1512 }
 0x3c8   :  { %v1517_v49 = vpop.permute.xlu1 %1516  ;;  %v1532_v50 = vsel %vm1531_vm8, %v1530_v47, %v1513_v39 }
 0x3c9   :  { %v1534_v46 = vsel %vm1533_vm9, %v1532_v50, %v1517_v49 }
 0x3cb   :  { %v1597_v57 = vpop.f32.mrf.mxu1 }
 0x3cc   :  { %v1598_v52 = vadd.f32 %v2590_v28, %v1597_v57 }
 0x3ce   :  { %1621 = vrot.lane.b32.xlu1 %v1598_v52, %s2026_s11 }
 0x3cf   :  { %v1521_v53 = vpop.permute.xlu0 %1520 }
 0x3d0   :  { %v1536_v58 = vsel %vm1535_vm10, %v1534_v46, %v1521_v53 }
 0x3d1   :  { %v1538_v59 = vsel %vm1537_vm11, %v1536_v58, %v1525_v55  ;;  %vm2671_vm11 = vmmov %vm2669_vm6 }
 0x3d2   :  { %1894 = vmatmul.msk.f32.vlgmr.msra.gmra.mxu0 %vm1552_vm12, %v1538_v59 }
 0x440   :  { %v1622_v14 = vpop.permute.xlu1 %1621 }
 0x44f   :  { %v1573_v62 = vpop.f32.mrf.mxu0 }
 0x450   :  { %v2597_v0 = vadd.f32 %v1921_v61, %v1573_v62 }
 0x452   :  { %v1600_v7 = vadd.f32 %v1598_v52, %v2597_v0 }
 0x454   :  { %v1895_v8 = vmul.f32 -1.442695, %v1600_v7 }
 0x456   :  { %1940 = vpow2.f32 %v1895_v8 }
 0x45c   :  { %v1941_v36 = vpop.eup %1940 }
 0x45d   :  { %v1604_v54 = vadd.f32 1.0, %v1941_v36 }
 0x45f   :  { %1942 = vrcp.f32 %v1604_v54  ;;  %v1616_v12 = vand.u32 2147483648, %v1604_v54  ;;  %v1614_v40 = vand.u32 2147483647, %v1604_v54  ;;  %vm1610_vm1 = vweird.f32 %v1604_v54 }
 0x461   :  { %v1617_v17 = vor.u32 1.1754944e-38, %v1616_v12  ;;  %vm1615_vm13 = vcmp.eq.f32.partialorder %v1614_v40, 8.507059e+37 }
 0x465   :  { %v1943_v9 = vpop.eup %1942 }
 0x466   :  { %v1606_v10 = vmul.f32 %v1943_v9, %v1604_v54  ;;  %vm1611_vm0 = vweird.f32 %v1943_v9 }
 0x467   :  { %vm1612_vm2 = vmor %vm1610_vm1, %vm1611_vm0 }
 0x468   :  { %v1607_v11 = vsub.f32 1.0, %v1606_v10 }
 0x46a   :  { %v1608_v13 = vmul.f32 %v1943_v9, %v1607_v11 }
 0x46c   :  { %v1609_v41 = vadd.f32 %v1943_v9, %v1608_v13 }
 0x46e   :  { %v1613_v15 = vsel %vm1612_vm2, %v1943_v9, %v1609_v41 }
 0x46f   :  { %v1618_v6 = vsel %vm1615_vm13, %v1617_v17, %v1613_v15  ;;  %vm1859_vm13 = vcmask 123904  }
 0x470   :  { %v1624_v18 = vmul.f32 %v1622_v14, %v1618_v6  ;;  %v1631_v1 = vsub.f32 1.0, %v1618_v6  ;;  %v1637_v20 = vmul.f32 0.0, %v1618_v6 }
 0x472   :  { %1626 = vrot.lane.b32.xlu0 %v1624_v18, %s2023_s8 }
 0x4e4   :  { %v1627_v19 = vpop.permute.xlu0 %1626 }
 0x4e5   :  { %v1629_v21 = vadd.f32 %v1627_v19, %v2597_v0 }
 0x4e7   :  { %1944 = vtanh.f32 %v1629_v21 }
 0x4ed   :  { %v1945_v32 = vpop.eup %1944 }
 0x4ee   :  { %1633 = vrot.lane.b32.xlu2 %v1945_v32, %s2027_s12 }
 0x548   :  { %v1634_v26 = vpop.permute.xlu2 %1633 }
 0x549   :  { %v1636_v4 = vmul.f32 %v1634_v26, %v1631_v1 }
 0x54b   :  { %v2603_v27 = vadd.f32 %v1637_v20, %v1636_v4 }
 0x54d   :  { %1641 = vrot.lane.b32.xlu1 %v2603_v27, %s2027_s12  ;;  %v1704_v39 = vrot.slane %v2603_v27, 6 }
 0x5bf   :  { %v1642_v30 = vpop.permute.xlu1 %1641 }
 0x5c0   :  { %1896 = vmatmul.msk.f32.vlgmr.msra.gmra.mxu2 %vm2670_vm14, %v1642_v30 }
 0x643   :  { %v1662_v63 = vpop.f32.mrf.mxu2 }
 0x644   :  { %v1663_v16 = vadd.f32 %v2590_v28, %v1662_v63 }
 0x646   :  { %v1666_v34 = vrot.slane %v1663_v16, 6 }
 0x648   :  { %1688 = vrot.lane.b32.xlu0 %v1666_v34, %s2026_s11  ;;  %v1668_v22 = vadd.f32 %v1666_v34, %v2597_v0 }
 0x64a   :  { %v1897_v23 = vmul.f32 -1.442695, %v1668_v22 }
 0x64c   :  { %1946 = vpow2.f32 %v1897_v23 }
 0x652   :  { %v1947_v37 = vpop.eup %1946 }
 0x653   :  { %v1672_v38 = vadd.f32 1.0, %v1947_v37 }
 0x655   :  { %1948 = vrcp.f32 %v1672_v38  ;;  %v1684_v3 = vand.u32 2147483648, %v1672_v38  ;;  %vm1678_vm3 = vweird.f32 %v1672_v38  ;;  %v1682_v56 = vand.u32 2147483647, %v1672_v38 }
 0x657   :  { %v1685_v51 = vor.u32 1.1754944e-38, %v1684_v3  ;;  %vm1683_vm5 = vcmp.eq.f32.partialorder %v1682_v56, 8.507059e+37 }
 0x65b   :  { %v1949_v24 = vpop.eup %1948 }
 0x65c   :  { %v1674_v43 = vmul.f32 %v1949_v24, %v1672_v38  ;;  %vm1679_vm15 = vweird.f32 %v1949_v24 }
 0x65d   :  { %vm1680_vm4 = vmor %vm1678_vm3, %vm1679_vm15 }
 0x65e   :  { %v1675_v31 = vsub.f32 1.0, %v1674_v43 }
 0x660   :  { %v1676_v45 = vmul.f32 %v1949_v24, %v1675_v31 }
 0x662   :  { %v1677_v25 = vadd.f32 %v1949_v24, %v1676_v45 }
 0x664   :  { %v1681_v60 = vsel %vm1680_vm4, %v1949_v24, %v1677_v25 }
 0x665   :  { %v1686_v33 = vsel %vm1683_vm5, %v1685_v51, %v1681_v60 }
 0x666   :  { %v1698_v42 = vsub.f32 1.0, %v1686_v33  ;;  %v1706_v57 = vmul.f32 %v1704_v39, %v1686_v33 }
 0x6ba   :  { %v1689_v5 = vpop.permute.xlu0 %1688 }
 0x6bb   :  { %v1691_v29 = vmul.f32 %v1689_v5, %v1686_v33 }
 0x6bd   :  { %1693 = vrot.lane.b32.xlu2 %v1691_v29, %s2023_s8 }
 0x717   :  { %v1694_v48 = vpop.permute.xlu2 %1693 }
 0x718   :  { %v1696_v35 = vadd.f32 %v1694_v48, %v2597_v0 }
 0x71a   :  { %1950 = vtanh.f32 %v1696_v35 }
 0x720   :  { %v1951_v2 = vpop.eup %1950 }
 0x721   :  { %1700 = vrot.lane.b32.xlu1 %v1951_v2, %s2027_s12 }
 0x793   :  { %v1701_v44 = vpop.permute.xlu1 %1700 }
 0x794   :  { %v1703_v47 = vmul.f32 %v1701_v44, %v1698_v42 }
 0x796   :  { %v1707_v49 = vadd.f32 %v1706_v57, %v1703_v47 }
 0x798   :  { %v1709_v50 = vrot.slane %v1707_v49, 2  ;;  %v1775_v13 = vrot.slane %v1707_v49, 6 }
 0x79a   :  { %1712 = vrot.lane.b32.xlu0 %v1709_v50, %s2027_s12  ;;  %v1711_v20 = vadd.f32 %v1709_v50, %v2603_v27 }
 0x80c   :  { %v1713_v52 = vpop.permute.xlu0 %1712 }
 0x80d   :  { %1898 = vmatmul.msk.f32.vlgmr.msra.gmra.mxu3 %vm2669_vm6, %v1713_v52 }
 0x890   :  { %v1733_v53 = vpop.f32.mrf.mxu3 }
 0x891   :  { %v1734_v46 = vadd.f32 %v2590_v28, %v1733_v53 }
 0x893   :  { %v1737_v55 = vrot.slane %v1734_v46, 4 }
 0x895   :  { %v1739_v58 = vadd.f32 %v1737_v55, %v2597_v0  ;;  %1759 = vrot.lane.b32.xlu2 %v1737_v55, %s2026_s11 }
 0x897   :  { %v1899_v59 = vmul.f32 -1.442695, %v1739_v58 }
 0x899   :  { %1952 = vpow2.f32 %v1899_v59 }
 0x89f   :  { %v1953_v61 = vpop.eup %1952 }
 0x8a0   :  { %v1743_v62 = vadd.f32 1.0, %v1953_v61 }
 0x8a2   :  { %1954 = vrcp.f32 %v1743_v62  ;;  %v1755_v54 = vand.u32 2147483648, %v1743_v62  ;;  %v1753_v10 = vand.u32 2147483647, %v1743_v62  ;;  %vm1749_vm8 = vweird.f32 %v1743_v62 }
 0x8a4   :  { %v1756_v12 = vor.u32 1.1754944e-38, %v1755_v54  ;;  %vm1754_vm10 = vcmp.eq.f32.partialorder %v1753_v10, 8.507059e+37 }
 0x8a8   :  { %v1955_v7 = vpop.eup %1954 }
 0x8a9   :  { %v1745_v8 = vmul.f32 %v1955_v7, %v1743_v62  ;;  %vm1750_vm7 = vweird.f32 %v1955_v7 }
 0x8aa   :  { %vm1751_vm9 = vmor %vm1749_vm8, %vm1750_vm7 }
 0x8ab   :  { %v1746_v36 = vsub.f32 1.0, %v1745_v8 }
 0x8ad   :  { %v1747_v9 = vmul.f32 %v1955_v7, %v1746_v36 }
 0x8af   :  { %v1748_v11 = vadd.f32 %v1955_v7, %v1747_v9 }
 0x8b1   :  { %v1752_v40 = vsel %vm1751_vm9, %v1955_v7, %v1748_v11 }
 0x8b2   :  { %v1757_v41 = vsel %vm1754_vm10, %v1756_v12, %v1752_v40 }
 0x8b3   :  { %v1777_v14 = vmul.f32 %v1775_v13, %v1757_v41  ;;  %v1769_v21 = vsub.f32 1.0, %v1757_v41 }
 0x8ef   :  { %v1760_v17 = vpop.permute.xlu2 %1759 }
 0x8f0   :  { %v1762_v15 = vmul.f32 %v1760_v17, %v1757_v41 }
 0x8f2   :  { %1764 = vrot.lane.b32.xlu1 %v1762_v15, %s2023_s8 }
 0x964   :  { %v1765_v6 = vpop.permute.xlu1 %1764 }
 0x965   :  { %v1767_v18 = vadd.f32 %v1765_v6, %v2597_v0 }
 0x967   :  { %1956 = vtanh.f32 %v1767_v18 }
 0x96d   :  { %v1957_v19 = vpop.eup %1956 }
 0x96e   :  { %1771 = vrot.lane.b32.xlu0 %v1957_v19, %s2027_s12 }
 0x9e0   :  { %v1772_v32 = vpop.permute.xlu0 %1771 }
 0x9e1   :  { %v1774_v1 = vmul.f32 %v1772_v32, %v1769_v21 }
 0x9e3   :  { %v1778_v26 = vadd.f32 %v1777_v14, %v1774_v1 }
 0x9e5   :  { %v1780_v4 = vrot.slane %v1778_v26, 4  ;;  %v1846_v2 = vrot.slane %v1778_v26, 6 }
 0x9e7   :  { %1783 = vrot.lane.b32.xlu2 %v1780_v4, %s2027_s12  ;;  %v1782_v30 = vadd.f32 %v1780_v4, %v1711_v20 }
 0xa41   :  { %v1784_v63 = vpop.permute.xlu2 %1783 }
 0xa42   :  { %1900 = vmatmul.msk.f32.vlgmr.msrb.gmra.mxu1 %vm2671_vm11, %v1784_v63 }
 0xabf   :  { %v1804_v16 = vpop.f32.mrf.mxu1 }
 0xac0   :  { %v1805_v34 = vadd.f32 %v2590_v28, %v1804_v16 }
 0xac2   :  { %v1808_v22 = vrot.slane %v1805_v34, 2 }
 0xac4   :  { %1830 = vrot.lane.b32.xlu1 %v1808_v22, %s2026_s11  ;;  %v1810_v23 = vadd.f32 %v1808_v22, %v2597_v0 }
 0xac6   :  { %v1901_v37 = vmul.f32 -1.442695, %v1810_v23 }
 0xac8   :  { %1958 = vpow2.f32 %v1901_v37 }
 0xace   :  { %v1959_v38 = vpop.eup %1958 }
 0xacf   :  { %v1814_v24 = vadd.f32 1.0, %v1959_v38 }
 0xad1   :  { %1960 = vrcp.f32 %v1814_v24  ;;  %v1826_v3 = vand.u32 2147483648, %v1814_v24  ;;  %vm1820_vm0 = vweird.f32 %v1814_v24  ;;  %v1824_v56 = vand.u32 2147483647, %v1814_v24 }
 0xad3   :  { %v1827_v60 = vor.u32 1.1754944e-38, %v1826_v3  ;;  %vm1825_vm2 = vcmp.eq.f32.partialorder %v1824_v56, 8.507059e+37 }
 0xad7   :  { %v1961_v27 = vpop.eup %1960 }
 0xad8   :  { %v1816_v43 = vmul.f32 %v1961_v27, %v1814_v24  ;;  %vm1821_vm12 = vweird.f32 %v1961_v27 }
 0xad9   :  { %vm1822_vm1 = vmor %vm1820_vm0, %vm1821_vm12 }
 0xada   :  { %v1817_v31 = vsub.f32 1.0, %v1816_v43 }
 0xadc   :  { %v1818_v45 = vmul.f32 %v1961_v27, %v1817_v31 }
 0xade   :  { %v1819_v25 = vadd.f32 %v1961_v27, %v1818_v45 }
 0xae0   :  { %v1823_v28 = vsel %vm1822_vm1, %v1961_v27, %v1819_v25 }
 0xae1   :  { %v1828_v5 = vsel %vm1825_vm2, %v1827_v60, %v1823_v28 }
 0xae2   :  { %v1840_v42 = vsub.f32 1.0, %v1828_v5  ;;  %v1848_v44 = vmul.f32 %v1846_v2, %v1828_v5 }
 0xb36   :  { %v1831_v51 = vpop.permute.xlu1 %1830 }
 0xb37   :  { %v1833_v33 = vmul.f32 %v1831_v51, %v1828_v5 }
 0xb39   :  { %1835 = vrot.lane.b32.xlu0 %v1833_v33, %s2023_s8  ;;  %s1866_s8 = sshll.u32 %s2032_s4, 4  ;;  %s1867_s8 = int_to_ptr.vmem [resolvable:$true] %s1866_s8 }
 0xbab   :  { %v1836_v29 = vpop.permute.xlu0 %1835 }
 0xbac   :  { %v1838_v48 = vadd.f32 %v1836_v29, %v2597_v0 }
 0xbae   :  { %1962 = vtanh.f32 %v1838_v48 }
 0xbb4   :  { %v1963_v35 = vpop.eup %1962 }
 0xbb5   :  { %1842 = vrot.lane.b32.xlu2 %v1963_v35, %s2027_s12 }
 0xc0f   :  { %v1843_v39 = vpop.permute.xlu2 %1842 }
 0xc10   :  { %v1845_v47 = vmul.f32 %v1843_v39, %v1840_v42 }
 0xc12   :  { %v1849_v57 = vadd.f32 %v1848_v44, %v1845_v47 }
 0xc14   :  { %v1851_v49 = vrot.slane %v1849_v57, 6 }
 0xc16   :  { %v1853_v50 = vadd.f32 %v1851_v49, %v1782_v30 }
 0xc18   :  { %v1854_v52 = vmul.f32 0.25, %v1853_v50 }
 0xc1a   :  { %1856 = vrot.lane.b32.xlu1 %v1854_v52, %s2027_s12 }
 0xc8c   :  { %v1857_v0 = vpop.permute.xlu1 %1856 }
 0xc8d   :  { %1860 = vst.msk [vmem:[#allocation5] sm:$0x3] %vm1859_vm13, %v1857_v0 }
 0xc8e   :  { %1871 = dma.vmem_to_hbm [thread:$0]  %s1867_s8, 32, %s1869_s15, [#allocation4]  }
 0xc8f   :  { %2014 = dma.done.wait [#allocation4], 32  }
 0xc90   :  { %2015 = vsyncadd [#allocation4], 4294967264 }
 0xc91   :  { %1876 = vsyncpa [#allocation3], 1 }
 0xc92   :  { %1877 = vsyncpa [#allocation4], 1 }

</bundles_post_ra>
